<compile_context>
chip_gen: v5e
topology: v5e:2x2
jax: 0.10.0
libtpu: 0.0.40
codegen_flags: <defaults>
</compile_context>

<pallas_src>
import jax
import jax.numpy as jnp
from jax.experimental import pallas as pl
from jax.experimental.pallas import tpu as pltpu


def _round_up(x, m):
    return ((x + m - 1) // m) * m


def _device_kind():
    try:
        return jax.devices()[0].device_kind.lower()
    except Exception:
        return ""


def _default_fuse_hidden():
    # Block-diagonal hidden fusion fills the 256x256 MXU on v6e/v7x.  On v5e
    # (4x128^2 MXU) the zero blocks would waste half the weight tiles, so the
    # kernel runs the two per-chain 128-wide matmuls instead.
    return "v5" not in _device_kind()


def _auto_block_batch(batch):
    # v7x: two TensorCores -> give each core one equal tile (even grid).
    # v5e/v6e: single TC and weights are VMEM-resident across tiles, so every
    # extra grid step is pure per-step + x/out DMA overhead -> one big tile.
    b8 = max(8, _round_up(batch, 8))
    if "v7" in _device_kind() and b8 >= 16:
        return _round_up((b8 + 1) // 2, 8)
    return min(b8, 1024)


def _make_kernel(num_layers, widths, hidden_dims, fuse_hidden):
    """Fused kernel for one batch tile: the z-selected member's base+prior MLP."""

    def kernel(z_ref, x_ref, *rest):
        del z_ref  # member selection happens in the BlockSpec index_maps
        w_refs = rest[:num_layers]
        b_ref = rest[num_layers]
        o_ref = rest[num_layers + 1]

        b_all = b_ref[0]                          # (L, Wb) f32, tiny
        h = x_ref[...].astype(jnp.bfloat16)       # (TB, d_in_pad) MXU operand

        for l in range(num_layers):
            n = widths[l]
            b = b_all[l:l + 1, :n]                # (1, n) f32
            if 0 < l < num_layers - 1 and not fuse_hidden:
                # v5e path: two per-chain matmuls on the diagonal blocks.
                ki, no = hidden_dims[l - 1], hidden_dims[l]
                hb = jnp.dot(h[:, :ki], w_refs[l][0, :ki, :no],
                             preferred_element_type=jnp.float32) + b[:, :no]
                hp = jnp.dot(h[:, ki:], w_refs[l][0, ki:, no:],
                             preferred_element_type=jnp.float32) + b[:, no:]
                h = jnp.concatenate([hb, hp], axis=-1)
            else:
                # One fused matmul (concat / block-diag / stacked-K weight),
                # bf16 operands, f32 accumulation + bias add.
                h = jnp.dot(h, w_refs[l][0],
                            preferred_element_type=jnp.float32) + b
            if l < num_layers - 1:
                h = jnp.maximum(h, 0.0).astype(jnp.bfloat16)

        o_ref[...] = h.astype(o_ref.dtype)        # lane-dense (TB, out_pad) store

    return kernel


def prepare_fused_params(base_params, prior_params, prior_scale, d_in_pad, out_pad):
    """Pack per-member base+prior params into fused per-layer weights.

    base_params / prior_params: list over layers of (W, b) with
      W: (E, d_in, d_out) f32,  b: (E, d_out) f32.

    Returns (weights, biases, widths):
      weights: list of (E, K_l, N_l) bf16:
        l = 0       : [W_base | W_prior]                 (K = d_in_pad)
        0 < l < L-1 : block_diag(W_base, W_prior)        (2H x 2H)
        l = L-1     : [W_base ; prior_scale * W_prior]   (K stacked, N -> out_pad)
      biases: (E, L, Wb) f32; last layer pre-summed with prior_scale; every
        row zero-padded to Wb = max layer width.
      widths: valid N_l per layer.
    Both the last layer's W and b are zero-padded along d_out, so the lane
    padding columns of the output are exactly zero.
    """
    num_layers = len(base_params)
    ens = base_params[0][0].shape[0]
    d_in = base_params[0][0].shape[1]
    weights, widths, b_rows = [], [], []

    if num_layers == 1:
        wb, bb = base_params[0]
        wp, bp = prior_params[0]
        w = wb + prior_scale * wp
        b = bb + prior_scale * bp
        out_dim = w.shape[-1]
        w = jnp.pad(w, ((0, 0), (0, d_in_pad - d_in), (0, out_pad - out_dim)))
        b = jnp.pad(b, ((0, 0), (0, out_pad - out_dim)))
        weights.append(w.astype(jnp.bfloat16))
        widths.append(out_pad)
        b_rows.append(b)
    else:
        # Layer 0: both chains consume the same x -> concat along d_out.
        wb, bb = base_params[0]
        wp, bp = prior_params[0]
        w0 = jnp.pad(jnp.concatenate([wb, wp], axis=-1),
                     ((0, 0), (0, d_in_pad - d_in), (0, 0)))
        weights.append(w0.astype(jnp.bfloat16))
        widths.append(int(w0.shape[-1]))
        b_rows.append(jnp.concatenate([bb, bp], axis=-1))

        # Hidden layers: block-diagonal packing (one 2H-wide matmul on v6e/v7x).
        for l in range(1, num_layers - 1):
            wb, bb = base_params[l]
            wp, bp = prior_params[l]
            _, k, n = wb.shape
            zero = jnp.zeros((ens, k, n), wb.dtype)
            w = jnp.concatenate([jnp.concatenate([wb, zero], axis=-1),
                                 jnp.concatenate([zero, wp], axis=-1)], axis=1)
            weights.append(w.astype(jnp.bfloat16))
            widths.append(2 * int(n))
            b_rows.append(jnp.concatenate([bb, bp], axis=-1))

        # Last layer: fold prior_scale + base/prior add into one stacked matmul.
        wb, bb = base_params[-1]
        wp, bp = prior_params[-1]
        w = jnp.concatenate([wb, prior_scale * wp], axis=1)     # (E, 2H, out)
        b = bb + prior_scale * bp
        out_dim = w.shape[-1]
        w = jnp.pad(w, ((0, 0), (0, 0), (0, out_pad - out_dim)))
        b = jnp.pad(b, ((0, 0), (0, out_pad - out_dim)))
        weights.append(w.astype(jnp.bfloat16))
        widths.append(out_pad)
        b_rows.append(b)

    w_b = max(widths)
    biases = jnp.stack(
        [jnp.pad(b, ((0, 0), (0, w_b - b.shape[-1]))) for b in b_rows], axis=1
    ).astype(jnp.float32)                                       # (E, L, Wb)
    return weights, biases, widths


def ensemble_q_forward(x, z, weights, biases, widths, *, out_dim, hidden_dims,
                       fuse_hidden=None, block_batch=None,
                       vmem_limit_bytes=32 * 1024 * 1024):
    """x: (B, state_dim+action_dim) f32, z: (1,) int32 epistemic index.
    Returns (B, out_dim) f32 = base_mlp_z(x) + prior_scale * prior_mlp_z(x)."""
    batch, d_in = x.shape
    num_layers = len(weights)
    d_in_pad = int(weights[0].shape[1])
    out_pad = int(widths[-1])
    if fuse_hidden is None:
        fuse_hidden = _default_fuse_hidden()
    tb = int(block_batch) if block_batch is not None else _auto_block_batch(batch)
    tb = _round_up(min(tb, _round_up(batch, 8)), 8)

    # VMEM guard (matters if hidden_dims / TB scale up; v7x only has 64 MiB
    # physical / 32 MiB default scoped): resident member weights + packed bias
    # + double-buffered x/out tiles must fit the scoped limit with headroom.
    w_bytes = sum(int(w.shape[1]) * int(w.shape[2]) * 2 for w in weights)
    b_bytes = int(biases.shape[1]) * int(biases.shape[2]) * 4

    def vmem_needed(tb_):
        return 2 * (w_bytes + b_bytes) + 2 * tb_ * (d_in_pad + out_pad) * 4

    while tb > 8 and vmem_needed(tb) > int(0.75 * vmem_limit_bytes):
        tb = max(8, _round_up(tb // 2, 8))

    b_pad = _round_up(batch, tb)
    x_pad = jnp.pad(x, ((0, b_pad - batch), (0, d_in_pad - d_in)))
    grid = (b_pad // tb,)

    # index_maps receive (batch_tile_idx, z_ref).  Parameter specs index only
    # z -> only member z is DMA'd and the blocks never change across batch
    # tiles, so weights stay VMEM-resident for the whole grid.
    in_specs = [pl.BlockSpec((tb, d_in_pad), lambda b, z_ref: (b, 0))]
    for w in weights:
        in_specs.append(pl.BlockSpec((1, int(w.shape[1]), int(w.shape[2])),
                                     lambda b, z_ref: (z_ref[0], 0, 0)))
    in_specs.append(pl.BlockSpec((1, int(biases.shape[1]), int(biases.shape[2])),
                                 lambda b, z_ref: (z_ref[0], 0, 0)))
    out_specs = pl.BlockSpec((tb, out_pad), lambda b, z_ref: (b, 0))

    flops = 2 * b_pad * sum(int(w.shape[1]) * int(w.shape[2]) for w in weights)
    bytes_accessed = x_pad.size * 4 + b_pad * out_pad * 4 + w_bytes + b_bytes

    out = pl.pallas_call(
        _make_kernel(num_layers, widths, hidden_dims, fuse_hidden),
        out_shape=jax.ShapeDtypeStruct((b_pad, out_pad), jnp.float32),
        grid_spec=pltpu.PrefetchScalarGridSpec(
            num_scalar_prefetch=1,
            grid=grid,
            in_specs=in_specs,
            out_specs=out_specs,
        ),
        compiler_params=pltpu.CompilerParams(
            dimension_semantics=("parallel",),
            vmem_limit_bytes=vmem_limit_bytes,
        ),
        cost_estimate=pl.CostEstimate(
            flops=int(flops), transcendentals=0,
            bytes_accessed=int(bytes_accessed)),
    )(z, x_pad, *weights, biases)
    return out[:batch, :out_dim]


def init_ensemble_params(key, input_dim, hidden_dims, output_dim, ensemble_size):
    """Deterministic init; per layer: W (E, d_in, d_out), b (E, d_out)."""
    dims = [input_dim] + list(hidden_dims) + [output_dim]
    params = []
    for l in range(len(dims) - 1):
        key, wk, bk = jax.random.split(key, 3)
        scale = float(dims[l]) ** -0.5
        w = jax.random.uniform(wk, (ensemble_size, dims[l], dims[l + 1]),
                               jnp.float32, -scale, scale)
        b = jax.random.uniform(bk, (ensemble_size, dims[l + 1]),
                               jnp.float32, -scale, scale)
        params.append((w, b))
    return params


def pearl_reference(x, z, base_params, prior_params, prior_scale):
    """Pure-JAX f32 forward matching the original PyTorch module."""
    zi = int(z[0])

    def run(params):
        h = x
        n = len(params)
        for l, (w, b) in enumerate(params):
            h = jnp.dot(h, w[zi], precision=jax.lax.Precision.HIGHEST) + b[zi]
            if l < n - 1:
                h = jnp.maximum(h, 0.0)
        return h

    return run(base_params) + prior_scale * run(prior_params)


def packed_reference(x, z, weights, biases, widths):
    """bf16-matched mirror of the fused kernel math (tight correctness check)."""
    zi = int(z[0])
    d_in_pad = int(weights[0].shape[1])
    h = jnp.pad(x, ((0, 0), (0, d_in_pad - x.shape[1]))).astype(jnp.bfloat16)
    num_layers = len(weights)
    for l in range(num_layers):
        b = biases[zi, l:l + 1, :widths[l]]
        h = jnp.dot(h, weights[l][zi], preferred_element_type=jnp.float32) + b
        if l < num_layers - 1:
            h = jnp.maximum(h, 0.0).astype(jnp.bfloat16)
    return h


if __name__ == "__main__":
    # Module hyperparameters (small but lane-friendly).
    state_dim, action_dim = 16, 8
    hidden_dims = [128, 128]
    output_dim = 1                # scalar Q-value per (s, a)
    ensemble_size = 4
    prior_scale = 0.3
    batch = 256

    key = jax.random.PRNGKey(0)
    key, sk, ak, zk, base_key, prior_key = jax.random.split(key, 6)

    input_dim = state_dim + action_dim
    base_params = init_ensemble_params(base_key, input_dim, hidden_dims,
                                       output_dim, ensemble_size)
    prior_params = init_ensemble_params(prior_key, input_dim, hidden_dims,
                                        output_dim, ensemble_size)

    d_in_pad = _round_up(input_dim, 128)   # lane-dense x load / clean MXU K
    out_pad = _round_up(output_dim, 128)   # lane-dense output store
    weights, biases, widths = prepare_fused_params(
        base_params, prior_params, prior_scale, d_in_pad, out_pad)

    # get_q_values(state, action, z) with 2-D actions: x = concat(state, action).
    state_batch = jax.random.normal(sk, (batch, state_dim), jnp.float32)
    action_batch = jax.random.normal(ak, (batch, action_dim), jnp.float32)
    x = jnp.concatenate([state_batch, action_batch], axis=-1)

    # Epistemic index z (resample_epistemic_index / `persistent` are host-side
    # RNG state, not part of the forward math).
    z = jax.random.randint(zk, (1,), 0, ensemble_size, dtype=jnp.int32)

    ref_f32 = pearl_reference(x, z, base_params, prior_params, prior_scale)
    ref_bf16 = packed_reference(x, z, weights, biases, widths)[:, :output_dim]

    # Exercise both compile-time MXU paths: fused block-diagonal hidden layers
    # (v6e/v7x) and split per-chain matmuls (v5e).  The auto choice is one of
    # these two, so this also covers the production path.
    for fuse_hidden in (True, False):
        out = ensemble_q_forward(
            x, z, weights, biases, widths, out_dim=output_dim,
            hidden_dims=hidden_dims, fuse_hidden=fuse_hidden)
        out = jax.block_until_ready(out)
        assert out.shape == (batch, output_dim)
        # Tight check vs. the bf16-matched mirror of the fused math.
        assert jnp.allclose(out, ref_bf16, atol=1e-3, rtol=1e-3), \
            "mismatch vs bf16 mirror"
        # Parity with the original f32 Pearl forward, up to bf16 precision.
        assert jnp.allclose(out, ref_f32, atol=5e-2, rtol=5e-2), \
            "mismatch vs f32 Pearl reference"

    # Default (auto fuse / auto block_batch) run; Q(s, a) per get_q_values:
    # squeeze the trailing output_dim=1 axis.
    out = ensemble_q_forward(x, z, weights, biases, widths, out_dim=output_dim,
                             hidden_dims=hidden_dims)
    q_values = jax.block_until_ready(out)[:, 0]
    assert q_values.shape == (batch,)

    # TODO(synk): the 3-D available-actions path of get_q_values
    # (extend_state_feature_by_available_action_space) is a pure reshape/tile
    # of the inputs before the kernel and is not implemented here.

    print("KERNEL_OK")
</pallas_src>

<mosaic_0001>
module attributes {stable_mosaic.version = 11 : i64} {
  func.func @kernel(%arg0: i32, %arg1: memref<1xi32, #tpu.memory_space<smem>>, %arg2: memref<256x128xf32, #tpu.memory_space<vmem>>, %arg3: memref<1x128x256xbf16, #tpu.memory_space<vmem>>, %arg4: memref<1x256x256xbf16, #tpu.memory_space<vmem>>, %arg5: memref<1x256x128xbf16, #tpu.memory_space<vmem>>, %arg6: memref<1x3x256xf32, #tpu.memory_space<vmem>>, %arg7: memref<256x128xf32, #tpu.memory_space<vmem>>) attributes {dimension_semantics = [#tpu.dimension_semantics<parallel>], iteration_bounds = array<i64: 1>, scalar_prefetch = 1 : i64, scratch_operands = 0 : i64, tpu.core_type = #tpu.core_type<tc>, window_params = [{transform_indices = @transform_0, window_bounds = array<i64: 256, 128>}, {transform_indices = @transform_1, window_bounds = array<i64: 1, 128, 256>}, {transform_indices = @transform_2, window_bounds = array<i64: 1, 256, 256>}, {transform_indices = @transform_3, window_bounds = array<i64: 1, 256, 128>}, {transform_indices = @transform_4, window_bounds = array<i64: 1, 3, 256>}, {transform_indices = @transform_5, window_bounds = array<i64: 256, 128>}]} {
    %c0 = arith.constant 0 : index
    %c0_0 = arith.constant 0 : index
    %c0_1 = arith.constant 0 : index
    %0 = vector.load %arg6[%c0, %c0_0, %c0_1] : memref<1x3x256xf32, #tpu.memory_space<vmem>>, vector<1x3x256xf32>
    %1 = vector.shape_cast %0 : vector<1x3x256xf32> to vector<3x256xf32>
    %c0_2 = arith.constant 0 : index
    %c0_3 = arith.constant 0 : index
    %2 = vector.load %arg2[%c0_2, %c0_3] : memref<256x128xf32, #tpu.memory_space<vmem>>, vector<256x128xf32>
    %3 = arith.truncf %2 : vector<256x128xf32> to vector<256x128xbf16>
    %4 = vector.extract_strided_slice %1 {offsets = [0, 0], sizes = [1, 256], strides = [1, 1]} : vector<3x256xf32> to vector<1x256xf32>
    %c0_4 = arith.constant 0 : index
    %c0_5 = arith.constant 0 : index
    %c0_6 = arith.constant 0 : index
    %5 = vector.load %arg3[%c0_4, %c0_5, %c0_6] : memref<1x128x256xbf16, #tpu.memory_space<vmem>>, vector<1x128x256xbf16>
    %6 = vector.shape_cast %5 : vector<1x128x256xbf16> to vector<128x256xbf16>
    %cst = arith.constant dense<0.000000e+00> : vector<256x256xf32>
    %7 = tpu.matmul %3, %6, %cst {dimension_numbers = #tpu.dot_dimension_numbers<[1], [0], [0], [1], [0, 0, 1, 1], [], []>} : vector<256x128xbf16>, vector<128x256xbf16>, vector<256x256xf32> -> vector<256x256xf32>
    %8 = vector.broadcast %4 : vector<1x256xf32> to vector<256x256xf32>
    %9 = arith.addf %7, %8 : vector<256x256xf32>
    %cst_7 = arith.constant 0.000000e+00 : f32
    %10 = vector.broadcast %cst_7 : f32 to vector<256x256xf32>
    %11 = arith.maximumf %9, %10 : vector<256x256xf32>
    %12 = arith.truncf %11 : vector<256x256xf32> to vector<256x256xbf16>
    %13 = vector.extract_strided_slice %1 {offsets = [1, 0], sizes = [1, 256], strides = [1, 1]} : vector<3x256xf32> to vector<1x256xf32>
    %c0_8 = arith.constant 0 : index
    %c0_9 = arith.constant 0 : index
    %c0_10 = arith.constant 0 : index
    %14 = vector.load %arg4[%c0_8, %c0_9, %c0_10] : memref<1x256x256xbf16, #tpu.memory_space<vmem>>, vector<1x256x256xbf16>
    %15 = vector.shape_cast %14 : vector<1x256x256xbf16> to vector<256x256xbf16>
    %cst_11 = arith.constant dense<0.000000e+00> : vector<256x256xf32>
    %16 = tpu.matmul %12, %15, %cst_11 {dimension_numbers = #tpu.dot_dimension_numbers<[1], [0], [0], [1], [0, 0, 1, 1], [], []>} : vector<256x256xbf16>, vector<256x256xbf16>, vector<256x256xf32> -> vector<256x256xf32>
    %17 = vector.broadcast %13 : vector<1x256xf32> to vector<256x256xf32>
    %18 = arith.addf %16, %17 : vector<256x256xf32>
    %cst_12 = arith.constant 0.000000e+00 : f32
    %19 = vector.broadcast %cst_12 : f32 to vector<256x256xf32>
    %20 = arith.maximumf %18, %19 : vector<256x256xf32>
    %21 = arith.truncf %20 : vector<256x256xf32> to vector<256x256xbf16>
    %22 = vector.extract_strided_slice %1 {offsets = [2, 0], sizes = [1, 128], strides = [1, 1]} : vector<3x256xf32> to vector<1x128xf32>
    %c0_13 = arith.constant 0 : index
    %c0_14 = arith.constant 0 : index
    %c0_15 = arith.constant 0 : index
    %23 = vector.load %arg5[%c0_13, %c0_14, %c0_15] : memref<1x256x128xbf16, #tpu.memory_space<vmem>>, vector<1x256x128xbf16>
    %24 = vector.shape_cast %23 : vector<1x256x128xbf16> to vector<256x128xbf16>
    %cst_16 = arith.constant dense<0.000000e+00> : vector<256x128xf32>
    %25 = tpu.matmul %21, %24, %cst_16 {dimension_numbers = #tpu.dot_dimension_numbers<[1], [0], [0], [1], [0, 0, 1, 1], [], []>} : vector<256x256xbf16>, vector<256x128xbf16>, vector<256x128xf32> -> vector<256x128xf32>
    %26 = vector.broadcast %22 : vector<1x128xf32> to vector<256x128xf32>
    %27 = arith.addf %25, %26 : vector<256x128xf32>
    %c0_17 = arith.constant 0 : index
    %c0_18 = arith.constant 0 : index
    %28 = vector.load %arg7[%c0_17, %c0_18] : memref<256x128xf32, #tpu.memory_space<vmem>>, vector<256x128xf32>
    tpu.vector_store %arg7[%c0_17, %c0_18], %27 {strides = array<i32>} : memref<256x128xf32, #tpu.memory_space<vmem>>, vector<256x128xf32>,
    return
  }
  func.func @transform_0(%arg0: i32, %arg1: memref<1xi32, #tpu.memory_space<smem>>) -> (i32, i32) {
    %c0_i32 = arith.constant 0 : i32
    %c0_i32_0 = arith.constant 0 : i32
    return %arg0, %c0_i32 : i32, i32
  }
  func.func @transform_1(%arg0: i32, %arg1: memref<1xi32, #tpu.memory_space<smem>>) -> (i32, i32, i32) {
    %c0 = arith.constant 0 : index
    %0 = memref.load %arg1[%c0] : memref<1xi32, #tpu.memory_space<smem>>
    %c0_i32 = arith.constant 0 : i32
    %c0_i32_0 = arith.constant 0 : i32
    %c0_i32_1 = arith.constant 0 : i32
    return %0, %c0_i32, %c0_i32_0 : i32, i32, i32
  }
  func.func @transform_2(%arg0: i32, %arg1: memref<1xi32, #tpu.memory_space<smem>>) -> (i32, i32, i32) {
    %c0 = arith.constant 0 : index
    %0 = memref.load %arg1[%c0] : memref<1xi32, #tpu.memory_space<smem>>
    %c0_i32 = arith.constant 0 : i32
    %c0_i32_0 = arith.constant 0 : i32
    %c0_i32_1 = arith.constant 0 : i32
    return %0, %c0_i32, %c0_i32_0 : i32, i32, i32
  }
  func.func @transform_3(%arg0: i32, %arg1: memref<1xi32, #tpu.memory_space<smem>>) -> (i32, i32, i32) {
    %c0 = arith.constant 0 : index
    %0 = memref.load %arg1[%c0] : memref<1xi32, #tpu.memory_space<smem>>
    %c0_i32 = arith.constant 0 : i32
    %c0_i32_0 = arith.constant 0 : i32
    %c0_i32_1 = arith.constant 0 : i32
    return %0, %c0_i32, %c0_i32_0 : i32, i32, i32
  }
  func.func @transform_4(%arg0: i32, %arg1: memref<1xi32, #tpu.memory_space<smem>>) -> (i32, i32, i32) {
    %c0 = arith.constant 0 : index
    %0 = memref.load %arg1[%c0] : memref<1xi32, #tpu.memory_space<smem>>
    %c0_i32 = arith.constant 0 : i32
    %c0_i32_0 = arith.constant 0 : i32
    %c0_i32_1 = arith.constant 0 : i32
    return %0, %c0_i32, %c0_i32_0 : i32, i32, i32
  }
  func.func @transform_5(%arg0: i32, %arg1: memref<1xi32, #tpu.memory_space<smem>>) -> (i32, i32) {
    %c0_i32 = arith.constant 0 : i32
    %c0_i32_0 = arith.constant 0 : i32
    return %arg0, %c0_i32 : i32, i32
  }
}

</mosaic_0001>

<bundles_post_ra>
// kernel: tpu_custom_call.1
= control target key start
LH: loop header
LB: loop body
LE: loop exit
PB: predicated region body
PF: predicated region fallthrough
CT: control target
= control target key end

     0   :  { %12 = vsyncpa [#allocation5], 0  ;;  %s2507_s0 = inlined_call_operand.<no memory space> [shape: s32[1], index: 0, kind: input, shape index: {}]   ;;  %s2508_s1 = inlined_call_operand.hbm [shape: f32[256,128], index: 1, kind: input, shape index: {}]   ;;  %s2509_s2 = inlined_call_operand.hbm [shape: bf16[4,128,256], index: 2, kind: input, shape index: {}]   ;;  %s2510_s3 = inlined_call_operand.hbm [shape: bf16[4,256,256], index: 3, kind: input, shape index: {}]   ;;  %s2511_s4 = inlined_call_operand.hbm [shape: bf16[4,256,128], index: 4, kind: input, shape index: {}]   ;;  %s2512_s5 = inlined_call_operand.vmem [shape: f32[4,3,256], index: 5, kind: input, shape index: {}]   ;;  %s2513_s6 = inlined_call_operand.hbm [shape: f32[256,128], index: 6, kind: output, shape index: {}]  }
   0x1   :  { %13 = vsyncpa [#allocation8], 0 }
   0x2   :  { %14 = vsyncpa [#allocation11], 0 }
   0x3   :  { %15 = vsyncpa [#allocation6], 0  ;;  %s1833_s23 = sshll.u32 %s2507_s0, 7  ;;  %s2039_s29 = smov [#allocation7]  }
   0x4   :  { %s36_s28 = scalar_lea.hbm %s2509_s2, %s1833_s23  ;;  %s39_s30 = sshll.u32 %s2039_s29, 4  ;;  %s40_s30 = int_to_ptr.vmem [resolvable:$true] %s39_s30 }
   0x5   :  { %s37_s7 = sshll.u32 %s36_s28, 4  ;;  %s20_s10 = sshll.u32 %s2508_s1, 4  ;;  %s38_s7 = int_to_ptr.hbm [resolvable:$true] %s37_s7  ;;  %s21_s10 = int_to_ptr.hbm [resolvable:$true] %s20_s10 }
   0x6   :  { %s1911_s11 = sshra.s32 %s38_s7, 4  ;;  %s1915_s15 = scalar_lea.hbm %s2509_s2, 512  ;;  %s1912_s11 = int_to_ptr.hbm [resolvable:$true] %s1911_s11 }
   0x7   :  { %s1913_s12 = scalar_lea.hbm %s1912_s11, 128  ;;  %p1916_p1 = scmp.lt.s32.totalorder %s1912_s11, %s2509_s2 }
   0x8   :  { %p1914_p0 = scmp.ne.s32.totalorder %s1912_s11, %s1913_s12  ;;  %p1917_p2 = scmp.lt.s32.totalorder %s1915_s15, %s1913_s12 }
   0xa   :  { %p1918_p3 = por %p1917_p2, %p1916_p1 }
   0xc   :  { %p1919_p4 = pnand %p1918_p3, %p1914_p0 }
   0xe   :  { %1922 = shalt.err (!%p1919_p4)
}
   0xf   :  { %s2040_s18 = smov 128   ;;  %s2041_s19 = smov 8  }
  0x10   :  { %45 = dma.hbm_to_vmem [thread:$0]  %s38_s7, 2048, %s40_s30, [#allocation8], %s2040_s18, %s2040_s18, %s2041_s19  }
  0x11   :  { %s2042_s1 = smov [#allocation4]   ;;  %s1834_s24 = sshll.u32 %s2507_s0, 8 }
  0x12   :  { %s22_s20 = sshll.u32 %s2042_s1, 4  ;;  %s53_s26 = scalar_lea.hbm %s2510_s3, %s1834_s24  ;;  %s23_s20 = int_to_ptr.vmem [resolvable:$true] %s22_s20 }
  0x13   :  { %28 = dma.hbm_to_vmem [thread:$0]  %s21_s10, 4096, %s23_s20, [#allocation5], %s2040_s18, %s2040_s18, %s2041_s19  }
  0x14   :  { %s54_s27 = sshll.u32 %s53_s26, 4  ;;  %s2043_s28 = smov [#allocation9]   ;;  %s55_s27 = int_to_ptr.hbm [resolvable:$true] %s54_s27 }
  0x15   :  { %s56_s29 = sshll.u32 %s2043_s28, 4  ;;  %s70_s11 = scalar_lea.hbm %s2511_s4, %s1833_s23  ;;  %s57_s29 = int_to_ptr.vmem [resolvable:$true] %s56_s29 }
  0x16   :  { %s1959_s12 = sshra.s32 %s55_s27, 4  ;;  %s1963_s10 = scalar_lea.hbm %s2510_s3, 1024  ;;  %s1960_s12 = int_to_ptr.hbm [resolvable:$true] %s1959_s12 }
  0x17   :  { %s1961_s13 = scalar_lea.hbm %s1960_s12, 256  ;;  %p1964_p6 = scmp.lt.s32.totalorder %s1960_s12, %s2510_s3 }
  0x18   :  { %p1962_p5 = scmp.ne.s32.totalorder %s1960_s12, %s1961_s13  ;;  %p1965_p7 = scmp.lt.s32.totalorder %s1963_s10, %s1961_s13 }
  0x1a   :  { %p1966_p8 = por %p1965_p7, %p1964_p6 }
  0x1c   :  { %p1967_p9 = pnand %p1966_p8, %p1962_p5 }
  0x1e   :  { %1970 = shalt.err (!%p1967_p9)
}
  0x1f   :  { %62 = dma.hbm_to_vmem [thread:$0]  %s55_s27, 4096, %s57_s29, [#allocation8], %s2040_s18, %s2040_s18, %s2041_s19  }
  0x20   :  { %s71_s23 = sshll.u32 %s70_s11, 4  ;;  %s2044_s1 = smov [#allocation10]   ;;  %s72_s23 = int_to_ptr.hbm [resolvable:$true] %s71_s23 }
  0x21   :  { %s73_s20 = sshll.u32 %s2044_s1, 4  ;;  %s1983_s21 = sshra.s32 %s72_s23, 4  ;;  %s74_s20 = int_to_ptr.vmem [resolvable:$true] %s73_s20  ;;  %s1984_s21 = int_to_ptr.hbm [resolvable:$true] %s1983_s21 }
  0x22   :  { %s1985_s22 = scalar_lea.hbm %s1984_s21, 128  ;;  %s1987_s3 = scalar_lea.hbm %s2511_s4, 512 }
  0x23   :  { %p1986_p10 = scmp.ne.s32.totalorder %s1984_s21, %s1985_s22  ;;  %p1988_p11 = scmp.lt.s32.totalorder %s1984_s21, %s2511_s4 }
  0x24   :  { %p1989_p12 = scmp.lt.s32.totalorder %s1987_s3, %s1985_s22 }
  0x26   :  { %p1990_p13 = por %p1989_p12, %p1988_p11 }
  0x28   :  { %p1991_p0 = pnand %p1990_p13, %p1986_p10 }
  0x2a   :  { %1994 = shalt.err (!%p1991_p0)
}
  0x2b   :  { %s2045_s27 = smov 64   ;;  %s2046_s28 = smov 4  }
  0x2c   :  { %79 = dma.hbm_to_vmem [thread:$0]  %s72_s23, 2048, %s74_s20, [#allocation11], %s2045_s27, %s2045_s27, %s2046_s28  }
  0x2d   :  { %2031 = dma.done.wait [#allocation5], 4096  }
  0x2e   :  { %2032 = vsyncadd [#allocation5], 4294963200 }
  0x2f   :  { %2033 = dma.done.wait [#allocation8], 6144  }
  0x30   :  { %2034 = vsyncadd [#allocation8], 4294961152 }
  0x31   :  { %2035 = dma.done.wait [#allocation11], 2048  }
  0x32   :  { %2036 = vsyncadd [#allocation11], 4294965248  ;;  %v1635_v0 = vld [vmem:[#allocation7 + $0x70] sm:$0xf]  ;;  %v1852_v1 = vld [vmem:[#allocation7 + $0x74] sm:$0xf0] }
  0x33   :  { %v1851_v2 = vld [vmem:[#allocation7 + $0x74] sm:$0xf]  ;;  %v1636_v3 = vor.u32 %v1852_v1, %v1635_v0  ;;  %v1637_v4 = vld [vmem:[#allocation7 + $0x78] sm:$0xf0]  ;;  %v1627_v5 = vld [vmem:[#allocation7 + $0x60] sm:$0xf] }
  0x34   :  { %v1850_v6 = vld [vmem:[#allocation7 + $0x64] sm:$0xf0]  ;;  %v1640_v7 = vor.u32 %v1851_v2, %v1637_v4  ;;  %v1849_v8 = vld [vmem:[#allocation7 + $0x64] sm:$0xf]  ;;  %v1629_v9 = vld [vmem:[#allocation7 + $0x68] sm:$0xf0] }
  0x35   :  { %273 = vmatpush.bf16.msra.mxu0 %v1636_v3  ;;  %v1628_v10 = vor.u32 %v1850_v6, %v1627_v5  ;;  %v1632_v11 = vor.u32 %v1849_v8, %v1629_v9  ;;  %v1619_v12 = vld [vmem:[#allocation7 + $0x50] sm:$0xf]  ;;  %v1848_v13 = vld [vmem:[#allocation7 + $0x54] sm:$0xf0]  ;;  %v1847_v14 = vld [vmem:[#allocation7 + $0x54] sm:$0xf] }
  0x36   :  { %362 = vmatpush.bf16.msra.mxu1 %v1640_v7  ;;  %v1621_v15 = vld [vmem:[#allocation7 + $0x58] sm:$0xf0]  ;;  %v1620_v16 = vor.u32 %v1848_v13, %v1619_v12  ;;  %v1611_v18 = vld [vmem:[#allocation7 + $0x40] sm:$0xf]  ;;  %v1846_v19 = vld [vmem:[#allocation7 + $0x44] sm:$0xf0] }
  0x37   :  { %v1624_v17 = vor.u32 %v1847_v14, %v1621_v15  ;;  %v1845_v20 = vld [vmem:[#allocation7 + $0x44] sm:$0xf]  ;;  %v1613_v21 = vld [vmem:[#allocation7 + $0x48] sm:$0xf0]  ;;  %v1612_v22 = vor.u32 %v1846_v19, %v1611_v18  ;;  %v1603_v24 = vld [vmem:[#allocation7 + $0x30] sm:$0xf] }
  0x38   :  { %v1616_v23 = vor.u32 %v1845_v20, %v1613_v21  ;;  %v1844_v25 = vld [vmem:[#allocation7 + $0x34] sm:$0xf0]  ;;  %v1843_v26 = vld [vmem:[#allocation7 + $0x34] sm:$0xf]  ;;  %v1605_v27 = vld [vmem:[#allocation7 + $0x38] sm:$0xf0] }
  0x39   :  { %274 = vmatpush.bf16.msra.mxu0 %v1628_v10  ;;  %v1604_v28 = vor.u32 %v1844_v25, %v1603_v24  ;;  %v1608_v29 = vor.u32 %v1843_v26, %v1605_v27  ;;  %v1595_v30 = vld [vmem:[#allocation7 + $0x20] sm:$0xf]  ;;  %v1842_v31 = vld [vmem:[#allocation7 + $0x24] sm:$0xf0]  ;;  %v1841_v32 = vld [vmem:[#allocation7 + $0x24] sm:$0xf] }
  0x3a   :  { %363 = vmatpush.bf16.msra.mxu1 %v1632_v11  ;;  %v1597_v33 = vld [vmem:[#allocation7 + $0x28] sm:$0xf0]  ;;  %v1596_v34 = vor.u32 %v1842_v31, %v1595_v30  ;;  %v1587_v36 = vld [vmem:[#allocation7 + $0x10] sm:$0xf]  ;;  %v1840_v37 = vld [vmem:[#allocation7 + $0x14] sm:$0xf0] }
  0x3b   :  { %v1600_v35 = vor.u32 %v1841_v32, %v1597_v33  ;;  %v1839_v38 = vld [vmem:[#allocation7 + $0x14] sm:$0xf]  ;;  %v1589_v39 = vld [vmem:[#allocation7 + $0x18] sm:$0xf0]  ;;  %v1588_v40 = vor.u32 %v1840_v37, %v1587_v36  ;;  %v1579_v42 = vld [vmem:[#allocation7] sm:$0xf] }
  0x3c   :  { %v1592_v41 = vor.u32 %v1839_v38, %v1589_v39  ;;  %v1838_v43 = vld [vmem:[#allocation7 + $0x4] sm:$0xf0]  ;;  %v1837_v44 = vld [vmem:[#allocation7 + $0x4] sm:$0xf]  ;;  %v1581_v45 = vld [vmem:[#allocation7 + $0x8] sm:$0xf0] }
  0x3d   :  { %275 = vmatpush.bf16.msra.mxu0 %v1620_v16  ;;  %v1867_v46 = vld [vmem:[#allocation9 + $0x74] sm:$0xf]  ;;  %v1701_v47 = vld [vmem:[#allocation9 + $0x78] sm:$0xf0]  ;;  %v1580_v50 = vor.u32 %v1838_v43, %v1579_v42  ;;  %v122_v51 = vld [vmem:[#allocation4] sm:$0xff]  ;;  %v1584_v53 = vor.u32 %v1837_v44, %v1581_v45  ;;  %p115_p1 = scmp.lt.s32.totalorder %s2507_s0, 3 }
  0x3e   :  { %364 = vmatpush.bf16.msra.mxu1 %v1624_v17  ;;  %v1883_v48 = vld [vmem:[#allocation9 + $0xf4] sm:$0xf]  ;;  %v1765_v49 = vld [vmem:[#allocation9 + $0xf8] sm:$0xf0]  ;;  %v123_v52 = vld [vmem:[#allocation4 + $0x8] sm:$0xff]  ;;  %v1704_v54 = vor.u32 %v1867_v46, %v1701_v47  ;;  %s1542_s15 = sshll.u32 %s2513_s6, 4  ;;  %s1543_s15 = int_to_ptr.hbm [resolvable:$true] %s1542_s15 }
  0x3f   :  { %v1768_v55 = vor.u32 %v1883_v48, %v1765_v49  ;;  %v154_v56 = vpack.c.bf16 %v123_v52, %v122_v51  ;;  %v1865_v57 = vld [vmem:[#allocation9 + $0x64] sm:$0xf]  ;;  %v1693_v58 = vld [vmem:[#allocation9 + $0x68] sm:$0xf0]  ;;  %v124_v63 = vld [vmem:[#allocation4 + $0x10] sm:$0xff]  ;;  %s2515_s0 = smov (!%p115_p1, %s2507_s0), 3 }
  0x40   :  { %v1881_v59 = vld [vmem:[#allocation9 + $0xe4] sm:$0xf]  ;;  %v1696_v60 = vor.u32 %v1865_v57, %v1693_v58  ;;  %v1757_v61 = vld [vmem:[#allocation9 + $0xe8] sm:$0xf0]  ;;  %v125_v0 = vld [vmem:[#allocation4 + $0x18] sm:$0xff]  ;;  %s1836_s8 = sshll.u32 %s2515_s0, 3 }
  0x41   :  { %276 = vmatpush.bf16.msra.mxu0 %v1612_v22  ;;  %v1760_v62 = vor.u32 %v1881_v59, %v1757_v61  ;;  %v155_v1 = vpack.c.bf16 %v125_v0, %v124_v63  ;;  %v126_v2 = vld [vmem:[#allocation4 + $0x20] sm:$0xff]  ;;  %v127_v3 = vld [vmem:[#allocation4 + $0x28] sm:$0xff]  ;;  %v1863_v5 = vld [vmem:[#allocation9 + $0x54] sm:$0xf]  ;;  %s2145_s12 = scalar_lea.vmem %s2512_s5, %s1836_s8  ;;  %s2047_s0 = smov [#allocation12]  }
  0x42   :  { %365 = vmatpush.bf16.msra.mxu1 %v1616_v23  ;;  %v156_v4 = vpack.c.bf16 %v127_v3, %v126_v2  ;;  %v1685_v6 = vld [vmem:[#allocation9 + $0x58] sm:$0xf0]  ;;  %v1879_v7 = vld [vmem:[#allocation9 + $0xd4] sm:$0xf]  ;;  %v130_v14 = vld [vmem:[#allocation4 + $0x40] sm:$0xff]  ;;  %s1540_s5 = sshll.u32 %s2047_s0, 4  ;;  %s1541_s5 = int_to_ptr.vmem [resolvable:$true] %s1540_s5 }
  0x43   :  { %v1688_v8 = vor.u32 %v1863_v5, %v1685_v6  ;;  %v1749_v9 = vld [vmem:[#allocation9 + $0xd8] sm:$0xf0]  ;;  %v128_v11 = vld [vmem:[#allocation4 + $0x30] sm:$0xff]  ;;  %v131_v15 = vld [vmem:[#allocation4 + $0x48] sm:$0xff] }
  0x44   :  { %v1752_v10 = vor.u32 %v1879_v7, %v1749_v9  ;;  %v129_v12 = vld [vmem:[#allocation4 + $0x38] sm:$0xff]  ;;  %v158_v16 = vpack.c.bf16 %v131_v15, %v130_v14  ;;  %v1861_v17 = vld [vmem:[#allocation9 + $0x44] sm:$0xf]  ;;  %v1677_v18 = vld [vmem:[#allocation9 + $0x48] sm:$0xf0] }
  0x45   :  { %277 = vmatpush.bf16.msra.mxu0 %v1604_v28  ;;  %v157_v13 = vpack.c.bf16 %v129_v12, %v128_v11  ;;  %v1877_v19 = vld [vmem:[#allocation9 + $0xc4] sm:$0xf]  ;;  %v1680_v20 = vor.u32 %v1861_v17, %v1677_v18  ;;  %v1741_v21 = vld [vmem:[#allocation9 + $0xc8] sm:$0xf0]  ;;  %v1699_v22 = vld [vmem:[#allocation9 + $0x70] sm:$0xf] }
  0x46   :  { %366 = vmatpush.bf16.msra.mxu1 %v1608_v29  ;;  %v1868_v23 = vld [vmem:[#allocation9 + $0x74] sm:$0xf0]  ;;  %v1744_v24 = vor.u32 %v1877_v19, %v1741_v21  ;;  %v1763_v26 = vld [vmem:[#allocation9 + $0xf0] sm:$0xf]  ;;  %v1691_v32 = vld [vmem:[#allocation9 + $0x60] sm:$0xf] }
  0x47   :  { %v1700_v25 = vor.u32 %v1868_v23, %v1699_v22  ;;  %v1884_v27 = vld [vmem:[#allocation9 + $0xf4] sm:$0xf0]  ;;  %v132_v29 = vld [vmem:[#allocation4 + $0x50] sm:$0xff]  ;;  %v1866_v33 = vld [vmem:[#allocation9 + $0x64] sm:$0xf0] }
  0x48   :  { %v1764_v28 = vor.u32 %v1884_v27, %v1763_v26  ;;  %v133_v30 = vld [vmem:[#allocation4 + $0x58] sm:$0xff]  ;;  %v1882_v36 = vld [vmem:[#allocation9 + $0xe4] sm:$0xf0]  ;;  %v1683_v38 = vld [vmem:[#allocation9 + $0x50] sm:$0xf] }
  0x49   :  { %278 = vmatpush.bf16.msra.mxu0 %v1596_v34  ;;  %745 = vmatpush.bf16.msra.mxu2 %v1700_v25  ;;  %v159_v31 = vpack.c.bf16 %v133_v30, %v132_v29  ;;  %v1755_v34 = vld [vmem:[#allocation9 + $0xe0] sm:$0xf]  ;;  %v1864_v39 = vld [vmem:[#allocation9 + $0x54] sm:$0xf0]  ;;  %v1862_v45 = vld [vmem:[#allocation9 + $0x44] sm:$0xf0] }
  0x4a   :  { %367 = vmatpush.bf16.msra.mxu1 %v1600_v35  ;;  %834 = vmatpush.bf16.msra.mxu3 %v1764_v28  ;;  %v1692_v35 = vor.u32 %v1866_v33, %v1691_v32  ;;  %v1756_v37 = vor.u32 %v1882_v36, %v1755_v34  ;;  %v1880_v42 = vld [vmem:[#allocation9 + $0xd4] sm:$0xf0]  ;;  %v1675_v44 = vld [vmem:[#allocation9 + $0x40] sm:$0xf]  ;;  %v1878_v47 = vld [vmem:[#allocation9 + $0xc4] sm:$0xf0] }
  0x4b   :  { %v1739_v46 = vld [vmem:[#allocation9 + $0xc0] sm:$0xf]  ;;  %v1676_v48 = vor.u32 %v1862_v45, %v1675_v44  ;;  %v135_v51 = vld [vmem:[#allocation4 + $0x68] sm:$0xff]  ;;  %v1667_v52 = vld [vmem:[#allocation9 + $0x30] sm:$0xf] }
  0x4c   :  { %v1740_v49 = vor.u32 %v1878_v47, %v1739_v46  ;;  %v1876_v57 = vld [vmem:[#allocation9 + $0xb4] sm:$0xf0]  ;;  %v1659_v59 = vld [vmem:[#allocation9 + $0x20] sm:$0xf]  ;;  %v1874_v63 = vld [vmem:[#allocation9 + $0xa4] sm:$0xf0] }
  0x4d   :  { %279 = vmatpush.bf16.msra.mxu0 %v1588_v40  ;;  %v1747_v40 = vld [vmem:[#allocation9 + $0xd0] sm:$0xf]  ;;  %746 = vmatpush.bf16.msra.mxu2 %v1692_v35  ;;  %v1859_v0 = vld [vmem:[#allocation9 + $0x34] sm:$0xf]  ;;  %v1733_v5 = vld [vmem:[#allocation9 + $0xb8] sm:$0xf0] }
  0x4e   :  { %368 = vmatpush.bf16.msra.mxu1 %v1592_v41  ;;  %v1684_v41 = vor.u32 %v1864_v39, %v1683_v38  ;;  %835 = vmatpush.bf16.msra.mxu3 %v1756_v37  ;;  %v1748_v43 = vor.u32 %v1880_v42, %v1747_v40  ;;  %v1875_v3 = vld [vmem:[#allocation9 + $0xb4] sm:$0xf]  ;;  %v1651_v7 = vld [vmem:[#allocation9 + $0x10] sm:$0xf]  ;;  %v1872_v11 = vld [vmem:[#allocation9 + $0x94] sm:$0xf0] }
  0x4f   :  { %v1736_v6 = vor.u32 %v1875_v3, %v1733_v5  ;;  %v1715_v9 = vld [vmem:[#allocation9 + $0x90] sm:$0xf]  ;;  %v1854_v14 = vld [vmem:[#allocation9 + $0x4] sm:$0xf0]  ;;  %v1707_v15 = vld [vmem:[#allocation9 + $0x80] sm:$0xf] }
  0x50   :  { %v1716_v12 = vor.u32 %v1872_v11, %v1715_v9  ;;  %v1870_v17 = vld [vmem:[#allocation9 + $0x84] sm:$0xf0]  ;;  %v136_v18 = vld [vmem:[#allocation4 + $0x70] sm:$0xff]  ;;  %v137_v19 = vld [vmem:[#allocation4 + $0x78] sm:$0xff] }
  0x51   :  { %280 = vmatpush.bf16.msra.mxu0 %v1580_v50  ;;  %747 = vmatpush.bf16.msra.mxu2 %v1684_v41  ;;  %v134_v50 = vld [vmem:[#allocation4 + $0x60] sm:$0xff]  ;;  %v161_v21 = vpack.c.bf16 %v137_v19, %v136_v18  ;;  %v1892_v22 = vld [vmem:[#allocation10 + $0x38] sm:$0xff]  ;;  %v139_v26 = vld [vmem:[#allocation4 + $0x88] sm:$0xff] }
  0x52   :  { %369 = vmatpush.bf16.msra.mxu1 %v1584_v53  ;;  %836 = vmatpush.bf16.msra.mxu3 %v1748_v43  ;;  %v1860_v53 = vld [vmem:[#allocation9 + $0x34] sm:$0xf0]  ;;  %v138_v25 = vld [vmem:[#allocation4 + $0x80] sm:$0xff]  ;;  %v1661_v35 = vld [vmem:[#allocation9 + $0x28] sm:$0xf0] }
  0x53   :  { %v1900_v23 = vld [vmem:[#allocation10 + $0x78] sm:$0xff]  ;;  %v162_v28 = vpack.c.bf16 %v139_v26, %v138_v25  ;;  %v1857_v34 = vld [vmem:[#allocation9 + $0x24] sm:$0xf]  ;;  %v1725_v38 = vld [vmem:[#allocation9 + $0xa8] sm:$0xf0] }
  0x54   :  { %281 = vmatmul.bf16.vlgmr.msra.gmra.mxu0 %v154_v56  ;;  %v1664_v36 = vor.u32 %v1857_v34, %v1661_v35  ;;  %v1873_v37 = vld [vmem:[#allocation9 + $0xa4] sm:$0xf] }
  0x55   :  { %923 = vmatpush.bf16.msrb.mxu0 %v1704_v54  ;;  %370 = vmatmul.bf16.vlgmr.msra.gmra.mxu1 %v154_v56  ;;  %v1731_v54 = vld [vmem:[#allocation9 + $0xb0] sm:$0xf]  ;;  %v1668_v56 = vor.u32 %v1860_v53, %v1667_v52  ;;  %v1728_v39 = vor.u32 %v1873_v37, %v1725_v38  ;;  %v142_v5 = vld [vmem:[#allocation4 + $0xa0] sm:$0xff]  ;;  %v1890_v37 = vld [vmem:[#allocation10 + $0x28] sm:$0xff] }
  0x56   :  { %1012 = vmatpush.bf16.msrb.mxu1 %v1768_v55  ;;  %748 = vmatpush.bf16.msra.mxu2 %v1676_v48  ;;  %v160_v55 = vpack.c.bf16 %v135_v51, %v134_v50  ;;  %v1732_v58 = vor.u32 %v1876_v57, %v1731_v54  ;;  %v140_v50 = vld [vmem:[#allocation4 + $0x90] sm:$0xff]  ;;  %v141_v51 = vld [vmem:[#allocation4 + $0x98] sm:$0xff] }
  0x57   :  { %837 = vmatpush.bf16.msra.mxu3 %v1740_v49  ;;  %v163_v54 = vpack.c.bf16 %v141_v51, %v140_v50  ;;  %v146_v50 = vld [vmem:[#allocation4 + $0xc0] sm:$0xff]  ;;  %v147_v51 = vld [vmem:[#allocation4 + $0xc8] sm:$0xff] }
  0x59   :  { %924 = vmatpush.bf16.msrb.mxu0 %v1696_v60  ;;  %v1858_v60 = vld [vmem:[#allocation9 + $0x24] sm:$0xf0] }
  0x5a   :  { %1013 = vmatpush.bf16.msrb.mxu1 %v1760_v62  ;;  %749 = vmatpush.bf16.msra.mxu2 %v1668_v56  ;;  %v1660_v61 = vor.u32 %v1858_v60, %v1659_v59  ;;  %v1723_v62 = vld [vmem:[#allocation9 + $0xa0] sm:$0xf]  ;;  %v1891_v56 = vld [vmem:[#allocation10 + $0x30] sm:$0xff] }
  0x5b   :  { %838 = vmatpush.bf16.msra.mxu3 %v1732_v58  ;;  %v1724_v2 = vor.u32 %v1874_v63, %v1723_v62  ;;  %v1899_v58 = vld [vmem:[#allocation10 + $0x70] sm:$0xff] }
  0x5d   :  { %925 = vmatpush.bf16.msrb.mxu0 %v1688_v8  ;;  %v1856_v8 = vld [vmem:[#allocation9 + $0x14] sm:$0xf0] }
  0x5e   :  { %1014 = vmatpush.bf16.msrb.mxu1 %v1752_v10  ;;  %750 = vmatpush.bf16.msra.mxu2 %v1660_v61  ;;  %v1652_v10 = vor.u32 %v1856_v8, %v1651_v7 }
  0x5f   :  { %839 = vmatpush.bf16.msra.mxu3 %v1724_v2 }
  0x61   :  { %926 = vmatpush.bf16.msrb.mxu0 %v1680_v20  ;;  %v1708_v20 = vor.u32 %v1870_v17, %v1707_v15  ;;  %v1871_v15 = vld [vmem:[#allocation9 + $0x94] sm:$0xf] }
  0x62   :  { %1015 = vmatpush.bf16.msrb.mxu1 %v1744_v24  ;;  %751 = vmatpush.bf16.msra.mxu2 %v1652_v10  ;;  %v2148_v24 = vld [vmem:[%s2145_s12] sm:$0x77] }
  0x63   :  { %840 = vmatpush.bf16.msra.mxu3 %v1716_v12  ;;  %v187_v27 = vperm.slane %v2148_v24, 0  ;;  %v188_v30 = vperm.slane %v2148_v24, 4  ;;  %v1855_v12 = vld [vmem:[#allocation9 + $0x14] sm:$0xf] }
  0x64   :  { %286 = vmatmul.bf16.gmra.mxu0 %v155_v1 }
  0x65   :  { %375 = vmatmul.bf16.gmra.mxu1 %v155_v1  ;;  %v1669_v1 = vld [vmem:[#allocation9 + $0x38] sm:$0xf0]  ;;  %v2152_v32 = vperm.slane %v187_v27, 0  ;;  %v2154_v33 = vperm.slane %v188_v30, 0 }
  0x66   :  { %1016 = vmatpush.bf16.msrb.mxu1 %v1736_v6  ;;  %v143_v6 = vld [vmem:[#allocation4 + $0xa8] sm:$0xff]  ;;  %v145_v30 = vld [vmem:[#allocation4 + $0xb8] sm:$0xff] }
  0x67   :  { %841 = vmatpush.bf16.msra.mxu3 %v1708_v20  ;;  %v164_v9 = vpack.c.bf16 %v143_v6, %v142_v5 }
  0x6a   :  { %1017 = vmatpush.bf16.msrb.mxu1 %v1728_v39  ;;  %v1898_v39 = vld [vmem:[#allocation10 + $0x68] sm:$0xff] }
  0x6b   :  { %1415 = vmatpush.bf16.msrb.mxu3 %v1900_v23 }
  0x6f   :  { %1416 = vmatpush.bf16.msrb.mxu3 %v1899_v58 }
  0x73   :  { %1417 = vmatpush.bf16.msrb.mxu3 %v1898_v39 }
  0x74   :  { %291 = vmatmul.bf16.gmra.mxu0 %v156_v4 }
  0x75   :  { %380 = vmatmul.bf16.gmra.mxu1 %v156_v4  ;;  %v1672_v4 = vor.u32 %v1859_v0, %v1669_v1 }
  0x77   :  { %927 = vmatpush.bf16.msrb.mxu0 %v1672_v4 }
  0x7b   :  { %928 = vmatpush.bf16.msrb.mxu0 %v1664_v36 }
  0x84   :  { %296 = vmatmul.bf16.gmra.mxu0 %v157_v13 }
  0x85   :  { %385 = vmatmul.bf16.gmra.mxu1 %v157_v13  ;;  %v1643_v13 = vld [vmem:[#allocation9] sm:$0xf] }
  0x94   :  { %301 = vmatmul.bf16.gmra.mxu0 %v158_v16 }
  0x95   :  { %390 = vmatmul.bf16.gmra.mxu1 %v158_v16  ;;  %v1644_v16 = vor.u32 %v1854_v14, %v1643_v13  ;;  %v1653_v13 = vld [vmem:[#allocation9 + $0x18] sm:$0xf0] }
  0x96   :  { %v1656_v14 = vor.u32 %v1855_v12, %v1653_v13  ;;  %v148_v13 = vld [vmem:[#allocation4 + $0xd0] sm:$0xff] }
  0x97   :  { %752 = vmatpush.bf16.msra.mxu2 %v1644_v16  ;;  %v1717_v16 = vld [vmem:[#allocation9 + $0x98] sm:$0xf0] }
  0x98   :  { %v1720_v17 = vor.u32 %v1871_v15, %v1717_v16  ;;  %929 = vmatpush.bf16.msrb.mxu0 %v1656_v14  ;;  %v149_v14 = vld [vmem:[#allocation4 + $0xd8] sm:$0xff] }
  0x9a   :  { %1018 = vmatpush.bf16.msrb.mxu1 %v1720_v17  ;;  %v167_v17 = vpack.c.bf16 %v149_v14, %v148_v13 }
  0x9b   :  { %1326 = vmatpush.bf16.msrb.mxu2 %v1892_v22 }
  0x9f   :  { %1327 = vmatpush.bf16.msrb.mxu2 %v1891_v56  ;;  %v166_v56 = vpack.c.bf16 %v147_v51, %v146_v50 }
  0xa3   :  { %1328 = vmatpush.bf16.msrb.mxu2 %v1890_v37  ;;  %v150_v37 = vld [vmem:[#allocation4 + $0xe0] sm:$0xff] }
  0xa4   :  { %306 = vmatmul.bf16.gmra.mxu0 %v159_v31 }
  0xa5   :  { %395 = vmatmul.bf16.gmra.mxu1 %v159_v31 }
  0xb4   :  { %311 = vmatmul.bf16.gmra.mxu0 %v160_v55 }
  0xb5   :  { %400 = vmatmul.bf16.gmra.mxu1 %v160_v55 }
  0xc4   :  { %316 = vmatmul.bf16.gmra.mxu0 %v161_v21 }
  0xc5   :  { %405 = vmatmul.bf16.gmra.mxu1 %v161_v21 }
  0xd1   :  { %v282_v29 = vpop.f32.mrf.mxu0 }
  0xd2   :  { %v371_v31 = vpop.f32.mrf.mxu1  ;;  %v283_v40 = vadd.f32 %v282_v29, %v2152_v32  ;;  %v144_v29 = vld [vmem:[#allocation4 + $0xb0] sm:$0xff] }
  0xd3   :  { %v372_v41 = vadd.f32 %v371_v31, %v2154_v33  ;;  %v165_v35 = vpack.c.bf16 %v145_v30, %v144_v29 }
  0xd4   :  { %321 = vmatmul.bf16.gmra.mxu0 %v162_v28  ;;  %v451_v46 = vmax.f32 %v283_v40, 0.0 }
  0xd5   :  { %410 = vmatmul.bf16.gmra.mxu1 %v162_v28  ;;  %v452_v48 = vmax.f32 %v372_v41, 0.0 }
  0xd9   :  { %v284_v42 = vpop.f32.mrf.mxu0 }
  0xda   :  { %v285_v43 = vadd.f32 %v284_v42, %v2152_v32  ;;  %v373_v44 = vpop.f32.mrf.mxu1 }
  0xdb   :  { %v374_v45 = vadd.f32 %v373_v44, %v2154_v33 }
  0xdc   :  { %v453_v47 = vmax.f32 %v285_v43, 0.0 }
  0xdd   :  { %v454_v49 = vmax.f32 %v374_v45, 0.0 }
  0xde   :  { %v2160_v52 = vpack.c.bf16 %v453_v47, %v451_v46 }
  0xdf   :  { %v2162_v53 = vpack.c.bf16 %v454_v49, %v452_v48 }
  0xe0   :  { %753 = vmatmul.bf16.vlgmr.msra.gmra.mxu2 %v2160_v52 }
  0xe1   :  { %842 = vmatmul.bf16.vlgmr.msra.gmra.mxu3 %v2162_v53  ;;  %v287_v55 = vpop.f32.mrf.mxu0 }
  0xe2   :  { %v376_v57 = vpop.f32.mrf.mxu1  ;;  %v288_v59 = vadd.f32 %v287_v55, %v2152_v32 }
  0xe3   :  { %v377_v60 = vadd.f32 %v376_v57, %v2154_v33 }
  0xe4   :  { %326 = vmatmul.bf16.gmra.mxu0 %v163_v54  ;;  %v455_v1 = vmax.f32 %v288_v59, 0.0  ;;  %v1853_v59 = vld [vmem:[#allocation9 + $0x4] sm:$0xf] }
  0xe5   :  { %415 = vmatmul.bf16.gmra.mxu1 %v163_v54  ;;  %v456_v3 = vmax.f32 %v377_v60, 0.0  ;;  %v1645_v60 = vld [vmem:[#allocation9 + $0x8] sm:$0xf0] }
  0xe9   :  { %v289_v61 = vpop.f32.mrf.mxu0 }
  0xea   :  { %v290_v62 = vadd.f32 %v289_v61, %v2152_v32  ;;  %v378_v63 = vpop.f32.mrf.mxu1  ;;  %v1648_v61 = vor.u32 %v1853_v59, %v1645_v60  ;;  %v153_v59 = vld [vmem:[#allocation4 + $0xf8] sm:$0xff] }
  0xeb   :  { %v379_v0 = vadd.f32 %v378_v63, %v2154_v33  ;;  %v1709_v63 = vld [vmem:[#allocation9 + $0x88] sm:$0xf0] }
  0xec   :  { %v457_v2 = vmax.f32 %v290_v62, 0.0  ;;  %v1869_v62 = vld [vmem:[#allocation9 + $0x84] sm:$0xf]  ;;  %930 = vmatpush.bf16.msrb.mxu0 %v1648_v61 }
  0xed   :  { %v458_v4 = vmax.f32 %v379_v0, 0.0  ;;  %v1712_v0 = vor.u32 %v1869_v62, %v1709_v63 }
  0xee   :  { %v2170_v7 = vpack.c.bf16 %v457_v2, %v455_v1 }
  0xef   :  { %v2172_v8 = vpack.c.bf16 %v458_v4, %v456_v3  ;;  %1019 = vmatpush.bf16.msrb.mxu1 %v1712_v0  ;;  %v1888_v0 = vld [vmem:[#allocation10 + $0x18] sm:$0xff] }
  0xf0   :  { %758 = vmatmul.bf16.gmra.mxu2 %v2170_v7 }
  0xf1   :  { %847 = vmatmul.bf16.gmra.mxu3 %v2172_v8  ;;  %v292_v10 = vpop.f32.mrf.mxu0 }
  0xf2   :  { %v381_v11 = vpop.f32.mrf.mxu1  ;;  %v293_v18 = vadd.f32 %v292_v10, %v2152_v32 }
  0xf3   :  { %v382_v19 = vadd.f32 %v381_v11, %v2154_v33 }
  0xf4   :  { %331 = vmatmul.bf16.gmra.mxu0 %v164_v9  ;;  %v459_v25 = vmax.f32 %v293_v18, 0.0 }
  0xf5   :  { %420 = vmatmul.bf16.gmra.mxu1 %v164_v9  ;;  %v460_v27 = vmax.f32 %v382_v19, 0.0  ;;  %v1889_v19 = vld [vmem:[#allocation10 + $0x20] sm:$0xff] }
  0xf6   :  { %1329 = vmatpush.bf16.msrb.mxu2 %v1889_v19 }
  0xf9   :  { %v294_v20 = vpop.f32.mrf.mxu0 }
  0xfa   :  { %v295_v21 = vadd.f32 %v294_v20, %v2152_v32  ;;  %v383_v22 = vpop.f32.mrf.mxu1  ;;  %1330 = vmatpush.bf16.msrb.mxu2 %v1888_v0 }
  0xfb   :  { %v384_v23 = vadd.f32 %v383_v22, %v2154_v33 }
  0xfc   :  { %v461_v26 = vmax.f32 %v295_v21, 0.0  ;;  %v1897_v21 = vld [vmem:[#allocation10 + $0x60] sm:$0xff] }
  0xfd   :  { %v462_v28 = vmax.f32 %v384_v23, 0.0  ;;  %1418 = vmatpush.bf16.msrb.mxu3 %v1897_v21 }
  0xfe   :  { %v2180_v31 = vpack.c.bf16 %v461_v26, %v459_v25 }
  0xff   :  { %v2182_v34 = vpack.c.bf16 %v462_v28, %v460_v27 }
 0x100   :  { %763 = vmatmul.bf16.gmra.mxu2 %v2180_v31 }
 0x101   :  { %852 = vmatmul.bf16.gmra.mxu3 %v2182_v34  ;;  %v297_v36 = vpop.f32.mrf.mxu0 }
 0x102   :  { %v386_v38 = vpop.f32.mrf.mxu1  ;;  %v298_v40 = vadd.f32 %v297_v36, %v2152_v32 }
 0x103   :  { %v387_v41 = vadd.f32 %v386_v38, %v2154_v33  ;;  %v151_v38 = vld [vmem:[#allocation4 + $0xe8] sm:$0xff] }
 0x104   :  { %336 = vmatmul.bf16.gmra.mxu0 %v165_v35  ;;  %v463_v46 = vmax.f32 %v298_v40, 0.0 }
 0x105   :  { %425 = vmatmul.bf16.gmra.mxu1 %v165_v35  ;;  %v464_v48 = vmax.f32 %v387_v41, 0.0  ;;  %v168_v41 = vpack.c.bf16 %v151_v38, %v150_v37 }
 0x109   :  { %v299_v42 = vpop.f32.mrf.mxu0 }
 0x10a   :  { %v300_v43 = vadd.f32 %v299_v42, %v2152_v32  ;;  %v388_v44 = vpop.f32.mrf.mxu1 }
 0x10b   :  { %v389_v45 = vadd.f32 %v388_v44, %v2154_v33 }
 0x10c   :  { %v465_v47 = vmax.f32 %v300_v43, 0.0 }
 0x10d   :  { %v466_v49 = vmax.f32 %v389_v45, 0.0 }
 0x10e   :  { %v2190_v54 = vpack.c.bf16 %v465_v47, %v463_v46 }
 0x10f   :  { %v2192_v55 = vpack.c.bf16 %v466_v49, %v464_v48 }
 0x110   :  { %768 = vmatmul.bf16.gmra.mxu2 %v2190_v54 }
 0x111   :  { %857 = vmatmul.bf16.gmra.mxu3 %v2192_v55  ;;  %v302_v57 = vpop.f32.mrf.mxu0 }
 0x112   :  { %v391_v58 = vpop.f32.mrf.mxu1  ;;  %v303_v1 = vadd.f32 %v302_v57, %v2152_v32 }
 0x113   :  { %v392_v2 = vadd.f32 %v391_v58, %v2154_v33  ;;  %v152_v58 = vld [vmem:[#allocation4 + $0xf0] sm:$0xff] }
 0x114   :  { %341 = vmatmul.bf16.gmra.mxu0 %v166_v56  ;;  %v467_v9 = vmax.f32 %v303_v1, 0.0  ;;  %v169_v62 = vpack.c.bf16 %v153_v59, %v152_v58 }
 0x115   :  { %430 = vmatmul.bf16.gmra.mxu1 %v166_v56  ;;  %v468_v11 = vmax.f32 %v392_v2, 0.0  ;;  %v1896_v2 = vld [vmem:[#allocation10 + $0x58] sm:$0xff] }
 0x116   :  { %1419 = vmatpush.bf16.msrb.mxu3 %v1896_v2 }
 0x119   :  { %v304_v3 = vpop.f32.mrf.mxu0 }
 0x11a   :  { %v305_v4 = vadd.f32 %v304_v3, %v2152_v32  ;;  %v393_v5 = vpop.f32.mrf.mxu1 }
 0x11b   :  { %v394_v6 = vadd.f32 %v393_v5, %v2154_v33 }
 0x11c   :  { %v469_v10 = vmax.f32 %v305_v4, 0.0 }
 0x11d   :  { %v470_v12 = vmax.f32 %v394_v6, 0.0 }
 0x11e   :  { %v2200_v15 = vpack.c.bf16 %v469_v10, %v467_v9 }
 0x11f   :  { %v2202_v16 = vpack.c.bf16 %v470_v12, %v468_v11 }
 0x120   :  { %773 = vmatmul.bf16.gmra.mxu2 %v2200_v15 }
 0x121   :  { %862 = vmatmul.bf16.gmra.mxu3 %v2202_v16  ;;  %v307_v18 = vpop.f32.mrf.mxu0 }
 0x122   :  { %v396_v20 = vpop.f32.mrf.mxu1  ;;  %v308_v22 = vadd.f32 %v307_v18, %v2152_v32 }
 0x123   :  { %v397_v23 = vadd.f32 %v396_v20, %v2154_v33 }
 0x124   :  { %346 = vmatmul.bf16.gmra.mxu0 %v167_v17  ;;  %v471_v29 = vmax.f32 %v308_v22, 0.0 }
 0x125   :  { %435 = vmatmul.bf16.gmra.mxu1 %v167_v17  ;;  %v472_v35 = vmax.f32 %v397_v23, 0.0 }
 0x129   :  { %v309_v25 = vpop.f32.mrf.mxu0 }
 0x12a   :  { %v310_v26 = vadd.f32 %v309_v25, %v2152_v32  ;;  %v398_v27 = vpop.f32.mrf.mxu1 }
 0x12b   :  { %v399_v28 = vadd.f32 %v398_v27, %v2154_v33 }
 0x12c   :  { %v473_v30 = vmax.f32 %v310_v26, 0.0 }
 0x12d   :  { %v474_v36 = vmax.f32 %v399_v28, 0.0 }
 0x12e   :  { %v2210_v39 = vpack.c.bf16 %v473_v30, %v471_v29  ;;  %v579_v30 = vperm.slane %v2148_v24, 1 }
 0x12f   :  { %v2212_v40 = vpack.c.bf16 %v474_v36, %v472_v35 }
 0x130   :  { %778 = vmatmul.bf16.gmra.mxu2 %v2210_v39 }
 0x131   :  { %867 = vmatmul.bf16.gmra.mxu3 %v2212_v40  ;;  %v312_v42 = vpop.f32.mrf.mxu0 }
 0x132   :  { %v401_v43 = vpop.f32.mrf.mxu1  ;;  %v313_v44 = vadd.f32 %v312_v42, %v2152_v32 }
 0x133   :  { %v402_v45 = vadd.f32 %v401_v43, %v2154_v33 }
 0x134   :  { %351 = vmatmul.bf16.gmra.mxu0 %v168_v41  ;;  %v475_v50 = vmax.f32 %v313_v44, 0.0 }
 0x135   :  { %440 = vmatmul.bf16.gmra.mxu1 %v168_v41  ;;  %v476_v56 = vmax.f32 %v402_v45, 0.0  ;;  %v1887_v41 = vld [vmem:[#allocation10 + $0x10] sm:$0xff] }
 0x136   :  { %1331 = vmatpush.bf16.msrb.mxu2 %v1887_v41 }
 0x139   :  { %v314_v46 = vpop.f32.mrf.mxu0 }
 0x13a   :  { %v315_v47 = vadd.f32 %v314_v46, %v2152_v32  ;;  %v403_v48 = vpop.f32.mrf.mxu1  ;;  %v1895_v46 = vld [vmem:[#allocation10 + $0x50] sm:$0xff] }
 0x13b   :  { %v404_v49 = vadd.f32 %v403_v48, %v2154_v33  ;;  %1420 = vmatpush.bf16.msrb.mxu3 %v1895_v46 }
 0x13c   :  { %v477_v51 = vmax.f32 %v315_v47, 0.0 }
 0x13d   :  { %v478_v57 = vmax.f32 %v404_v49, 0.0 }
 0x13e   :  { %v2220_v60 = vpack.c.bf16 %v477_v51, %v475_v50 }
 0x13f   :  { %v2222_v61 = vpack.c.bf16 %v478_v57, %v476_v56 }
 0x140   :  { %783 = vmatmul.bf16.gmra.mxu2 %v2220_v60 }
 0x141   :  { %872 = vmatmul.bf16.gmra.mxu3 %v2222_v61  ;;  %v317_v63 = vpop.f32.mrf.mxu0 }
 0x142   :  { %v406_v1 = vpop.f32.mrf.mxu1  ;;  %v318_v3 = vadd.f32 %v317_v63, %v2152_v32 }
 0x143   :  { %v407_v4 = vadd.f32 %v406_v1, %v2154_v33 }
 0x144   :  { %356 = vmatmul.bf16.gmra.mxu0 %v169_v62  ;;  %v479_v11 = vmax.f32 %v318_v3, 0.0 }
 0x145   :  { %445 = vmatmul.bf16.gmra.mxu1 %v169_v62  ;;  %v480_v13 = vmax.f32 %v407_v4, 0.0 }
 0x149   :  { %v319_v5 = vpop.f32.mrf.mxu0 }
 0x14a   :  { %v320_v6 = vadd.f32 %v319_v5, %v2152_v32  ;;  %v408_v9 = vpop.f32.mrf.mxu1 }
 0x14b   :  { %v409_v10 = vadd.f32 %v408_v9, %v2154_v33 }
 0x14c   :  { %v481_v12 = vmax.f32 %v320_v6, 0.0 }
 0x14d   :  { %v482_v14 = vmax.f32 %v409_v10, 0.0 }
 0x14e   :  { %v2230_v17 = vpack.c.bf16 %v481_v12, %v479_v11 }
 0x14f   :  { %v2232_v18 = vpack.c.bf16 %v482_v14, %v480_v13 }
 0x150   :  { %788 = vmatmul.bf16.gmra.mxu2 %v2230_v17 }
 0x151   :  { %877 = vmatmul.bf16.gmra.mxu3 %v2232_v18  ;;  %v322_v19 = vpop.f32.mrf.mxu0 }
 0x152   :  { %v411_v20 = vpop.f32.mrf.mxu1  ;;  %v323_v21 = vadd.f32 %v322_v19, %v2152_v32 }
 0x153   :  { %v412_v22 = vadd.f32 %v411_v20, %v2154_v33 }
 0x154   :  { %931 = vmatmul.bf16.vlgmr.msrb.gmra.mxu0 %v2160_v52  ;;  %v483_v28 = vmax.f32 %v323_v21, 0.0 }
 0x155   :  { %1020 = vmatmul.bf16.vlgmr.msrb.gmra.mxu1 %v2162_v53  ;;  %v484_v35 = vmax.f32 %v412_v22, 0.0  ;;  %v2248_v53 = vperm.slane %v579_v30, 1 }
 0x159   :  { %v324_v23 = vpop.f32.mrf.mxu0 }
 0x15a   :  { %v325_v25 = vadd.f32 %v324_v23, %v2152_v32  ;;  %v413_v26 = vpop.f32.mrf.mxu1 }
 0x15b   :  { %v414_v27 = vadd.f32 %v413_v26, %v2154_v33 }
 0x15c   :  { %v485_v29 = vmax.f32 %v325_v25, 0.0 }
 0x15d   :  { %v486_v36 = vmax.f32 %v414_v27, 0.0 }
 0x15e   :  { %v2243_v37 = vpack.c.bf16 %v485_v29, %v483_v28 }
 0x15f   :  { %v2245_v52 = vpack.c.bf16 %v486_v36, %v484_v35 }
 0x160   :  { %793 = vmatmul.bf16.gmra.mxu2 %v2243_v37 }
 0x161   :  { %882 = vmatmul.bf16.gmra.mxu3 %v2245_v52  ;;  %v327_v38 = vpop.f32.mrf.mxu0 }
 0x162   :  { %v416_v42 = vpop.f32.mrf.mxu1  ;;  %v328_v48 = vadd.f32 %v327_v38, %v2152_v32 }
 0x163   :  { %v754_v43 = vpop.f32.mrf.mxu2  ;;  %v417_v49 = vadd.f32 %v416_v42, %v2154_v33 }
 0x164   :  { %v755_v44 = vadd.f32 %v754_v43, %v2248_v53  ;;  %v843_v45 = vpop.f32.mrf.mxu3  ;;  %936 = vmatmul.bf16.gmra.mxu0 %v2170_v7  ;;  %v487_v59 = vmax.f32 %v328_v48, 0.0 }
 0x165   :  { %1025 = vmatmul.bf16.gmra.mxu1 %v2172_v8  ;;  %v488_v8 = vmax.f32 %v417_v49, 0.0 }
 0x166   :  { %v844_v47 = vadd.f32 %v843_v45, %v755_v44  ;;  %v1886_v44 = vld [vmem:[#allocation10 + $0x8] sm:$0xff] }
 0x167   :  { %1332 = vmatpush.bf16.msrb.mxu2 %v1886_v44 }
 0x168   :  { %v1101_v4 = vmax.f32 %v844_v47, 0.0 }
 0x169   :  { %v329_v50 = vpop.f32.mrf.mxu0 }
 0x16a   :  { %v330_v51 = vadd.f32 %v329_v50, %v2152_v32  ;;  %v418_v56 = vpop.f32.mrf.mxu1  ;;  %v1894_v50 = vld [vmem:[#allocation10 + $0x48] sm:$0xff] }
 0x16b   :  { %v419_v57 = vadd.f32 %v418_v56, %v2154_v33  ;;  %v756_v58 = vpop.f32.mrf.mxu2  ;;  %1421 = vmatpush.bf16.msrb.mxu3 %v1894_v50  ;;  %v1885_v50 = vld [vmem:[#allocation10] sm:$0xff] }
 0x16c   :  { %v489_v62 = vmax.f32 %v330_v51, 0.0  ;;  %v757_v7 = vadd.f32 %v756_v58, %v2248_v53  ;;  %v845_v63 = vpop.f32.mrf.mxu3  ;;  %1333 = vmatpush.bf16.msrb.mxu2 %v1885_v50 }
 0x16d   :  { %v490_v0 = vmax.f32 %v419_v57, 0.0 }
 0x16e   :  { %v846_v1 = vadd.f32 %v845_v63, %v757_v7  ;;  %v2259_v2 = vpack.c.bf16 %v489_v62, %v487_v59 }
 0x16f   :  { %v2261_v3 = vpack.c.bf16 %v490_v0, %v488_v8 }
 0x170   :  { %v1103_v5 = vmax.f32 %v846_v1, 0.0  ;;  %798 = vmatmul.bf16.gmra.mxu2 %v2259_v2 }
 0x171   :  { %887 = vmatmul.bf16.gmra.mxu3 %v2261_v3  ;;  %v332_v6 = vpop.f32.mrf.mxu0 }
 0x172   :  { %v2265_v9 = vpack.c.bf16 %v1103_v5, %v1101_v4  ;;  %v421_v10 = vpop.f32.mrf.mxu1  ;;  %v333_v19 = vadd.f32 %v332_v6, %v2152_v32 }
 0x173   :  { %v759_v11 = vpop.f32.mrf.mxu2  ;;  %v422_v20 = vadd.f32 %v421_v10, %v2154_v33 }
 0x174   :  { %v760_v12 = vadd.f32 %v759_v11, %v2248_v53  ;;  %v848_v13 = vpop.f32.mrf.mxu3  ;;  %941 = vmatmul.bf16.gmra.mxu0 %v2180_v31  ;;  %v491_v27 = vmax.f32 %v333_v19, 0.0 }
 0x175   :  { %1030 = vmatmul.bf16.gmra.mxu1 %v2182_v34  ;;  %v492_v31 = vmax.f32 %v422_v20, 0.0 }
 0x176   :  { %v849_v14 = vadd.f32 %v848_v13, %v760_v12 }
 0x178   :  { %v1105_v41 = vmax.f32 %v849_v14, 0.0 }
 0x179   :  { %v334_v21 = vpop.f32.mrf.mxu0 }
 0x17a   :  { %v335_v22 = vadd.f32 %v334_v21, %v2152_v32  ;;  %v423_v23 = vpop.f32.mrf.mxu1 }
 0x17b   :  { %v424_v25 = vadd.f32 %v423_v23, %v2154_v33  ;;  %v761_v26 = vpop.f32.mrf.mxu2 }
 0x17c   :  { %v493_v28 = vmax.f32 %v335_v22, 0.0  ;;  %v762_v29 = vadd.f32 %v761_v26, %v2248_v53  ;;  %v850_v30 = vpop.f32.mrf.mxu3 }
 0x17d   :  { %v494_v35 = vmax.f32 %v424_v25, 0.0 }
 0x17e   :  { %v851_v34 = vadd.f32 %v850_v30, %v762_v29  ;;  %v2275_v36 = vpack.c.bf16 %v493_v28, %v491_v27 }
 0x17f   :  { %v2277_v38 = vpack.c.bf16 %v494_v35, %v492_v31 }
 0x180   :  { %v1107_v42 = vmax.f32 %v851_v34, 0.0  ;;  %803 = vmatmul.bf16.gmra.mxu2 %v2275_v36 }
 0x181   :  { %892 = vmatmul.bf16.gmra.mxu3 %v2277_v38  ;;  %v337_v43 = vpop.f32.mrf.mxu0 }
 0x182   :  { %v426_v45 = vpop.f32.mrf.mxu1  ;;  %v2281_v46 = vpack.c.bf16 %v1107_v42, %v1105_v41  ;;  %v338_v56 = vadd.f32 %v337_v43, %v2152_v32 }
 0x183   :  { %v764_v47 = vpop.f32.mrf.mxu2  ;;  %v427_v57 = vadd.f32 %v426_v45, %v2154_v33 }
 0x184   :  { %v765_v48 = vadd.f32 %v764_v47, %v2248_v53  ;;  %v853_v49 = vpop.f32.mrf.mxu3  ;;  %946 = vmatmul.bf16.gmra.mxu0 %v2190_v54  ;;  %v495_v8 = vmax.f32 %v338_v56, 0.0 }
 0x185   :  { %1035 = vmatmul.bf16.gmra.mxu1 %v2192_v55  ;;  %v496_v55 = vmax.f32 %v427_v57, 0.0 }
 0x186   :  { %v854_v51 = vadd.f32 %v853_v49, %v765_v48 }
 0x188   :  { %v1109_v11 = vmax.f32 %v854_v51, 0.0 }
 0x189   :  { %v339_v58 = vpop.f32.mrf.mxu0 }
 0x18a   :  { %v340_v59 = vadd.f32 %v339_v58, %v2152_v32  ;;  %v428_v62 = vpop.f32.mrf.mxu1 }
 0x18b   :  { %v429_v7 = vadd.f32 %v428_v62, %v2154_v33  ;;  %v766_v63 = vpop.f32.mrf.mxu2  ;;  %v1893_v62 = vld [vmem:[#allocation10 + $0x40] sm:$0xff] }
 0x18c   :  { %v497_v0 = vmax.f32 %v340_v59, 0.0  ;;  %v767_v54 = vadd.f32 %v766_v63, %v2248_v53  ;;  %v855_v1 = vpop.f32.mrf.mxu3  ;;  %1422 = vmatpush.bf16.msrb.mxu3 %v1893_v62 }
 0x18d   :  { %v498_v4 = vmax.f32 %v429_v7, 0.0 }
 0x18e   :  { %v856_v5 = vadd.f32 %v855_v1, %v767_v54  ;;  %v2291_v6 = vpack.c.bf16 %v497_v0, %v495_v8 }
 0x18f   :  { %v2293_v10 = vpack.c.bf16 %v498_v4, %v496_v55 }
 0x190   :  { %v1111_v12 = vmax.f32 %v856_v5, 0.0  ;;  %808 = vmatmul.bf16.gmra.mxu2 %v2291_v6 }
 0x191   :  { %897 = vmatmul.bf16.gmra.mxu3 %v2293_v10  ;;  %v342_v13 = vpop.f32.mrf.mxu0 }
 0x192   :  { %v431_v14 = vpop.f32.mrf.mxu1  ;;  %v2297_v19 = vpack.c.bf16 %v1111_v12, %v1109_v11  ;;  %v343_v25 = vadd.f32 %v342_v13, %v2152_v32 }
 0x193   :  { %v769_v20 = vpop.f32.mrf.mxu2  ;;  %v432_v26 = vadd.f32 %v431_v14, %v2154_v33 }
 0x194   :  { %v770_v21 = vadd.f32 %v769_v20, %v2248_v53  ;;  %v858_v22 = vpop.f32.mrf.mxu3  ;;  %951 = vmatmul.bf16.gmra.mxu0 %v2200_v15  ;;  %v499_v35 = vmax.f32 %v343_v25, 0.0 }
 0x195   :  { %1040 = vmatmul.bf16.gmra.mxu1 %v2202_v16  ;;  %v500_v15 = vmax.f32 %v432_v26, 0.0 }
 0x196   :  { %v859_v23 = vadd.f32 %v858_v22, %v770_v21 }
 0x198   :  { %v1113_v47 = vmax.f32 %v859_v23, 0.0 }
 0x199   :  { %v344_v27 = vpop.f32.mrf.mxu0 }
 0x19a   :  { %v345_v28 = vadd.f32 %v344_v27, %v2152_v32  ;;  %v433_v29 = vpop.f32.mrf.mxu1 }
 0x19b   :  { %v434_v30 = vadd.f32 %v433_v29, %v2154_v33  ;;  %v771_v31 = vpop.f32.mrf.mxu2 }
 0x19c   :  { %v501_v34 = vmax.f32 %v345_v28, 0.0  ;;  %v772_v41 = vadd.f32 %v771_v31, %v2248_v53  ;;  %v860_v42 = vpop.f32.mrf.mxu3 }
 0x19d   :  { %v502_v43 = vmax.f32 %v434_v30, 0.0 }
 0x19e   :  { %v861_v16 = vadd.f32 %v860_v42, %v772_v41  ;;  %v2307_v44 = vpack.c.bf16 %v501_v34, %v499_v35 }
 0x19f   :  { %v2309_v45 = vpack.c.bf16 %v502_v43, %v500_v15 }
 0x1a0   :  { %v1115_v48 = vmax.f32 %v861_v16, 0.0  ;;  %813 = vmatmul.bf16.gmra.mxu2 %v2307_v44 }
 0x1a1   :  { %902 = vmatmul.bf16.gmra.mxu3 %v2309_v45  ;;  %v347_v49 = vpop.f32.mrf.mxu0 }
 0x1a2   :  { %v436_v51 = vpop.f32.mrf.mxu1  ;;  %v2313_v56 = vpack.c.bf16 %v1115_v48, %v1113_v47  ;;  %v348_v63 = vadd.f32 %v347_v49, %v2152_v32 }
 0x1a3   :  { %v774_v57 = vpop.f32.mrf.mxu2  ;;  %v437_v8 = vadd.f32 %v436_v51, %v2154_v33 }
 0x1a4   :  { %v775_v58 = vadd.f32 %v774_v57, %v2248_v53  ;;  %v863_v59 = vpop.f32.mrf.mxu3  ;;  %956 = vmatmul.bf16.gmra.mxu0 %v2210_v39  ;;  %v503_v5 = vmax.f32 %v348_v63, 0.0 }
 0x1a5   :  { %1045 = vmatmul.bf16.gmra.mxu1 %v2212_v40  ;;  %v504_v40 = vmax.f32 %v437_v8, 0.0 }
 0x1a6   :  { %v864_v7 = vadd.f32 %v863_v59, %v775_v58 }
 0x1a8   :  { %v1117_v22 = vmax.f32 %v864_v7, 0.0 }
 0x1a9   :  { %v349_v0 = vpop.f32.mrf.mxu0 }
 0x1aa   :  { %v350_v54 = vadd.f32 %v349_v0, %v2152_v32  ;;  %v438_v1 = vpop.f32.mrf.mxu1 }
 0x1ab   :  { %v439_v55 = vadd.f32 %v438_v1, %v2154_v33  ;;  %v776_v4 = vpop.f32.mrf.mxu2 }
 0x1ac   :  { %v505_v11 = vmax.f32 %v350_v54, 0.0  ;;  %v777_v39 = vadd.f32 %v776_v4, %v2248_v53  ;;  %v865_v12 = vpop.f32.mrf.mxu3 }
 0x1ad   :  { %v506_v13 = vmax.f32 %v439_v55, 0.0 }
 0x1ae   :  { %v866_v14 = vadd.f32 %v865_v12, %v777_v39  ;;  %v2323_v20 = vpack.c.bf16 %v505_v11, %v503_v5 }
 0x1af   :  { %v2325_v21 = vpack.c.bf16 %v506_v13, %v504_v40 }
 0x1b0   :  { %v1119_v23 = vmax.f32 %v866_v14, 0.0  ;;  %818 = vmatmul.bf16.gmra.mxu2 %v2323_v20 }
 0x1b1   :  { %907 = vmatmul.bf16.gmra.mxu3 %v2325_v21  ;;  %v352_v25 = vpop.f32.mrf.mxu0 }
 0x1b2   :  { %v441_v26 = vpop.f32.mrf.mxu1  ;;  %v2329_v27 = vpack.c.bf16 %v1119_v23, %v1117_v22  ;;  %v353_v35 = vadd.f32 %v352_v25, %v2152_v32 }
 0x1b3   :  { %v779_v28 = vpop.f32.mrf.mxu2  ;;  %v442_v34 = vadd.f32 %v441_v26, %v2154_v33 }
 0x1b4   :  { %v780_v29 = vadd.f32 %v779_v28, %v2248_v53  ;;  %v868_v30 = vpop.f32.mrf.mxu3  ;;  %961 = vmatmul.bf16.gmra.mxu0 %v2220_v60  ;;  %v507_v47 = vmax.f32 %v353_v35, 0.0 }
 0x1b5   :  { %1050 = vmatmul.bf16.gmra.mxu1 %v2222_v61  ;;  %v508_v60 = vmax.f32 %v442_v34, 0.0 }
 0x1b6   :  { %v869_v31 = vadd.f32 %v868_v30, %v780_v29  ;;  %v580_v29 = vperm.slane %v2148_v24, 5 }
 0x1b8   :  { %v1121_v59 = vmax.f32 %v869_v31, 0.0  ;;  %v2362_v35 = vperm.slane %v580_v29, 1 }
 0x1b9   :  { %v354_v41 = vpop.f32.mrf.mxu0 }
 0x1ba   :  { %v355_v42 = vadd.f32 %v354_v41, %v2152_v32  ;;  %v443_v15 = vpop.f32.mrf.mxu1 }
 0x1bb   :  { %v444_v43 = vadd.f32 %v443_v15, %v2154_v33  ;;  %v781_v16 = vpop.f32.mrf.mxu2 }
 0x1bc   :  { %v509_v48 = vmax.f32 %v355_v42, 0.0  ;;  %v782_v49 = vadd.f32 %v781_v16, %v2248_v53  ;;  %v870_v50 = vpop.f32.mrf.mxu3 }
 0x1bd   :  { %v510_v51 = vmax.f32 %v444_v43, 0.0 }
 0x1be   :  { %v871_v61 = vadd.f32 %v870_v50, %v782_v49  ;;  %v2339_v57 = vpack.c.bf16 %v509_v48, %v507_v47 }
 0x1bf   :  { %v2341_v58 = vpack.c.bf16 %v510_v51, %v508_v60 }
 0x1c0   :  { %v1123_v62 = vmax.f32 %v871_v61, 0.0  ;;  %823 = vmatmul.bf16.gmra.mxu2 %v2339_v57 }
 0x1c1   :  { %912 = vmatmul.bf16.gmra.mxu3 %v2341_v58  ;;  %v357_v7 = vpop.f32.mrf.mxu0 }
 0x1c2   :  { %v446_v63 = vpop.f32.mrf.mxu1  ;;  %v2345_v8 = vpack.c.bf16 %v1123_v62, %v1121_v59  ;;  %v358_v4 = vadd.f32 %v357_v7, %v2152_v32 }
 0x1c3   :  { %v784_v0 = vpop.f32.mrf.mxu2  ;;  %v447_v5 = vadd.f32 %v446_v63, %v2154_v33 }
 0x1c4   :  { %v785_v54 = vadd.f32 %v784_v0, %v2248_v53  ;;  %v873_v1 = vpop.f32.mrf.mxu3  ;;  %966 = vmatmul.bf16.gmra.mxu0 %v2230_v17  ;;  %v511_v14 = vmax.f32 %v358_v4, 0.0 }
 0x1c5   :  { %1055 = vmatmul.bf16.gmra.mxu1 %v2232_v18  ;;  %v512_v17 = vmax.f32 %v447_v5, 0.0 }
 0x1c6   :  { %v874_v55 = vadd.f32 %v873_v1, %v785_v54 }
 0x1c8   :  { %v1125_v31 = vmax.f32 %v874_v55, 0.0 }
 0x1c9   :  { %v359_v11 = vpop.f32.mrf.mxu0 }
 0x1ca   :  { %v360_v39 = vadd.f32 %v359_v11, %v2152_v32  ;;  %v448_v12 = vpop.f32.mrf.mxu1 }
 0x1cb   :  { %v449_v40 = vadd.f32 %v448_v12, %v2154_v33  ;;  %v786_v13 = vpop.f32.mrf.mxu2 }
 0x1cc   :  { %v513_v22 = vmax.f32 %v360_v39, 0.0  ;;  %v787_v23 = vadd.f32 %v786_v13, %v2248_v53  ;;  %v875_v25 = vpop.f32.mrf.mxu3 }
 0x1cd   :  { %v514_v26 = vmax.f32 %v449_v40, 0.0 }
 0x1ce   :  { %v876_v18 = vadd.f32 %v875_v25, %v787_v23  ;;  %v2355_v28 = vpack.c.bf16 %v513_v22, %v511_v14 }
 0x1cf   :  { %v2358_v30 = vpack.c.bf16 %v514_v26, %v512_v17 }
 0x1d0   :  { %v1127_v32 = vmax.f32 %v876_v18, 0.0  ;;  %828 = vmatmul.bf16.gmra.mxu2 %v2355_v28 }
 0x1d1   :  { %917 = vmatmul.bf16.gmra.mxu3 %v2358_v30  ;;  %v932_v33 = vpop.f32.mrf.mxu0 }
 0x1d2   :  { %v1021_v34 = vpop.f32.mrf.mxu1  ;;  %v2364_v41 = vpack.c.bf16 %v1127_v32, %v1125_v31  ;;  %v933_v24 = vadd.f32 %v932_v33, %v2362_v35 }
 0x1d3   :  { %v789_v42 = vpop.f32.mrf.mxu2 }
 0x1d4   :  { %v790_v15 = vadd.f32 %v789_v42, %v2248_v53  ;;  %v878_v43 = vpop.f32.mrf.mxu3  ;;  %971 = vmatmul.bf16.gmra.mxu0 %v2243_v37  ;;  %v1022_v48 = vadd.f32 %v1021_v34, %v933_v24 }
 0x1d5   :  { %1060 = vmatmul.bf16.gmra.mxu1 %v2245_v52 }
 0x1d6   :  { %v879_v16 = vadd.f32 %v878_v43, %v790_v15  ;;  %v1102_v62 = vmax.f32 %v1022_v48, 0.0 }
 0x1d8   :  { %v1129_v0 = vmax.f32 %v879_v16, 0.0 }
 0x1d9   :  { %v934_v47 = vpop.f32.mrf.mxu0 }
 0x1da   :  { %v935_v49 = vadd.f32 %v934_v47, %v2362_v35  ;;  %v1023_v50 = vpop.f32.mrf.mxu1 }
 0x1db   :  { %v791_v60 = vpop.f32.mrf.mxu2 }
 0x1dc   :  { %v1024_v51 = vadd.f32 %v1023_v50, %v935_v49  ;;  %v792_v61 = vadd.f32 %v791_v60, %v2248_v53  ;;  %v880_v59 = vpop.f32.mrf.mxu3 }
 0x1de   :  { %v1104_v7 = vmax.f32 %v1024_v51, 0.0  ;;  %v881_v63 = vadd.f32 %v880_v59, %v792_v61 }
 0x1e0   :  { %v1166_v37 = vpack.c.bf16 %v1104_v7, %v1102_v62  ;;  %v1131_v54 = vmax.f32 %v881_v63, 0.0  ;;  %1334 = vmatmul.bf16.vlgmr.msrb.gmra.mxu2 %v2265_v9 }
 0x1e1   :  { %v937_v52 = vpop.f32.mrf.mxu0 }
 0x1e2   :  { %v1026_v1 = vpop.f32.mrf.mxu1  ;;  %1423 = vmatmul.bf16.vlgmr.msrb.gmra.mxu3 %v1166_v37  ;;  %v2373_v55 = vpack.c.bf16 %v1131_v54, %v1129_v0  ;;  %v938_v39 = vadd.f32 %v937_v52, %v2362_v35 }
 0x1e3   :  { %v794_v4 = vpop.f32.mrf.mxu2 }
 0x1e4   :  { %v795_v5 = vadd.f32 %v794_v4, %v2248_v53  ;;  %v883_v11 = vpop.f32.mrf.mxu3  ;;  %976 = vmatmul.bf16.gmra.mxu0 %v2259_v2  ;;  %v1027_v13 = vadd.f32 %v1026_v1, %v938_v39 }
 0x1e5   :  { %1065 = vmatmul.bf16.gmra.mxu1 %v2261_v3 }
 0x1e6   :  { %v884_v12 = vadd.f32 %v883_v11, %v795_v5  ;;  %v1106_v26 = vmax.f32 %v1027_v13, 0.0 }
 0x1e8   :  { %v1133_v31 = vmax.f32 %v884_v12, 0.0 }
 0x1e9   :  { %v939_v40 = vpop.f32.mrf.mxu0 }
 0x1ea   :  { %v940_v9 = vadd.f32 %v939_v40, %v2362_v35  ;;  %v1028_v14 = vpop.f32.mrf.mxu1 }
 0x1eb   :  { %v796_v22 = vpop.f32.mrf.mxu2 }
 0x1ec   :  { %v1029_v23 = vadd.f32 %v1028_v14, %v940_v9  ;;  %v797_v25 = vadd.f32 %v796_v22, %v2248_v53  ;;  %v885_v17 = vpop.f32.mrf.mxu3 }
 0x1ee   :  { %v1108_v18 = vmax.f32 %v1029_v23, 0.0  ;;  %v886_v29 = vadd.f32 %v885_v17, %v797_v25 }
 0x1f0   :  { %v1135_v2 = vmax.f32 %v886_v29, 0.0  ;;  %1339 = vmatmul.bf16.gmra.mxu2 %v2281_v46  ;;  %v1168_v3 = vpack.c.bf16 %v1108_v18, %v1106_v26 }
 0x1f1   :  { %v942_v32 = vpop.f32.mrf.mxu0 }
 0x1f2   :  { %v1031_v33 = vpop.f32.mrf.mxu1  ;;  %1428 = vmatmul.bf16.gmra.mxu3 %v1168_v3  ;;  %v2382_v34 = vpack.c.bf16 %v1135_v2, %v1133_v31  ;;  %v943_v24 = vadd.f32 %v942_v32, %v2362_v35 }
 0x1f3   :  { %v799_v42 = vpop.f32.mrf.mxu2 }
 0x1f4   :  { %v800_v15 = vadd.f32 %v799_v42, %v2248_v53  ;;  %v888_v43 = vpop.f32.mrf.mxu3  ;;  %981 = vmatmul.bf16.gmra.mxu0 %v2275_v36  ;;  %v1032_v48 = vadd.f32 %v1031_v33, %v943_v24 }
 0x1f5   :  { %1070 = vmatmul.bf16.gmra.mxu1 %v2277_v38 }
 0x1f6   :  { %v889_v16 = vadd.f32 %v888_v43, %v800_v15  ;;  %v1110_v59 = vmax.f32 %v1032_v48, 0.0 }
 0x1f8   :  { %v1137_v63 = vmax.f32 %v889_v16, 0.0 }
 0x1f9   :  { %v944_v47 = vpop.f32.mrf.mxu0 }
 0x1fa   :  { %v945_v46 = vadd.f32 %v944_v47, %v2362_v35  ;;  %v1033_v49 = vpop.f32.mrf.mxu1 }
 0x1fb   :  { %v801_v50 = vpop.f32.mrf.mxu2 }
 0x1fc   :  { %v1034_v60 = vadd.f32 %v1033_v49, %v945_v46  ;;  %v802_v51 = vadd.f32 %v801_v50, %v2248_v53  ;;  %v890_v61 = vpop.f32.mrf.mxu3 }
 0x1fe   :  { %v1112_v62 = vmax.f32 %v1034_v60, 0.0  ;;  %v891_v7 = vadd.f32 %v890_v61, %v802_v51 }
 0x200   :  { %v1139_v36 = vmax.f32 %v891_v7, 0.0  ;;  %1344 = vmatmul.bf16.gmra.mxu2 %v2297_v19  ;;  %v1170_v38 = vpack.c.bf16 %v1112_v62, %v1110_v59 }
 0x201   :  { %v947_v0 = vpop.f32.mrf.mxu0 }
 0x202   :  { %v1036_v37 = vpop.f32.mrf.mxu1  ;;  %1433 = vmatmul.bf16.gmra.mxu3 %v1170_v38  ;;  %v2391_v54 = vpack.c.bf16 %v1139_v36, %v1137_v63  ;;  %v948_v5 = vadd.f32 %v947_v0, %v2362_v35 }
 0x203   :  { %v804_v52 = vpop.f32.mrf.mxu2 }
 0x204   :  { %v805_v1 = vadd.f32 %v804_v52, %v2248_v53  ;;  %v893_v4 = vpop.f32.mrf.mxu3  ;;  %986 = vmatmul.bf16.gmra.mxu0 %v2291_v6  ;;  %v1037_v12 = vadd.f32 %v1036_v37, %v948_v5 }
 0x205   :  { %1075 = vmatmul.bf16.gmra.mxu1 %v2293_v10 }
 0x206   :  { %v894_v11 = vadd.f32 %v893_v4, %v805_v1  ;;  %v1114_v23 = vmax.f32 %v1037_v12, 0.0 }
 0x208   :  { %v1141_v26 = vmax.f32 %v894_v11, 0.0 }
 0x209   :  { %v949_v39 = vpop.f32.mrf.mxu0 }
 0x20a   :  { %v950_v19 = vadd.f32 %v949_v39, %v2362_v35  ;;  %v1038_v40 = vpop.f32.mrf.mxu1 }
 0x20b   :  { %v806_v13 = vpop.f32.mrf.mxu2 }
 0x20c   :  { %v1039_v9 = vadd.f32 %v1038_v40, %v950_v19  ;;  %v807_v14 = vadd.f32 %v806_v13, %v2248_v53  ;;  %v895_v22 = vpop.f32.mrf.mxu3 }
 0x20e   :  { %v1116_v25 = vmax.f32 %v1039_v9, 0.0  ;;  %v896_v17 = vadd.f32 %v895_v22, %v807_v14 }
 0x210   :  { %v1143_v6 = vmax.f32 %v896_v17, 0.0  ;;  %1349 = vmatmul.bf16.gmra.mxu2 %v2313_v56  ;;  %v1172_v10 = vpack.c.bf16 %v1116_v25, %v1114_v23 }
 0x211   :  { %v952_v18 = vpop.f32.mrf.mxu0 }
 0x212   :  { %v1041_v29 = vpop.f32.mrf.mxu1  ;;  %1438 = vmatmul.bf16.gmra.mxu3 %v1172_v10  ;;  %v2400_v31 = vpack.c.bf16 %v1143_v6, %v1141_v26  ;;  %v953_v33 = vadd.f32 %v952_v18, %v2362_v35 }
 0x213   :  { %v809_v2 = vpop.f32.mrf.mxu2 }
 0x214   :  { %v810_v3 = vadd.f32 %v809_v2, %v2248_v53  ;;  %v898_v32 = vpop.f32.mrf.mxu3  ;;  %991 = vmatmul.bf16.gmra.mxu0 %v2307_v44  ;;  %v1042_v43 = vadd.f32 %v1041_v29, %v953_v33 }
 0x215   :  { %1080 = vmatmul.bf16.gmra.mxu1 %v2309_v45 }
 0x216   :  { %v899_v42 = vadd.f32 %v898_v32, %v810_v3  ;;  %v1118_v49 = vmax.f32 %v1042_v43, 0.0 }
 0x218   :  { %v1145_v51 = vmax.f32 %v899_v42, 0.0 }
 0x219   :  { %v954_v15 = vpop.f32.mrf.mxu0 }
 0x21a   :  { %v955_v56 = vadd.f32 %v954_v15, %v2362_v35  ;;  %v1043_v24 = vpop.f32.mrf.mxu1 }
 0x21b   :  { %v811_v16 = vpop.f32.mrf.mxu2 }
 0x21c   :  { %v1044_v47 = vadd.f32 %v1043_v24, %v955_v56  ;;  %v812_v48 = vadd.f32 %v811_v16, %v2248_v53  ;;  %v900_v46 = vpop.f32.mrf.mxu3 }
 0x21e   :  { %v1120_v50 = vmax.f32 %v1044_v47, 0.0  ;;  %v901_v60 = vadd.f32 %v900_v46, %v812_v48 }
 0x220   :  { %v1174_v44 = vpack.c.bf16 %v1120_v50, %v1118_v49  ;;  %v1147_v61 = vmax.f32 %v901_v60, 0.0  ;;  %1354 = vmatmul.bf16.gmra.mxu2 %v2329_v27 }
 0x221   :  { %v957_v45 = vpop.f32.mrf.mxu0 }
 0x222   :  { %v1046_v59 = vpop.f32.mrf.mxu1  ;;  %1443 = vmatmul.bf16.gmra.mxu3 %v1174_v44  ;;  %v2409_v62 = vpack.c.bf16 %v1147_v61, %v1145_v51  ;;  %v958_v38 = vadd.f32 %v957_v45, %v2362_v35 }
 0x223   :  { %v814_v7 = vpop.f32.mrf.mxu2 }
 0x224   :  { %v815_v63 = vadd.f32 %v814_v7, %v2248_v53  ;;  %v903_v36 = vpop.f32.mrf.mxu3  ;;  %996 = vmatmul.bf16.gmra.mxu0 %v2323_v20  ;;  %v1047_v52 = vadd.f32 %v1046_v59, %v958_v38 }
 0x225   :  { %1085 = vmatmul.bf16.gmra.mxu1 %v2325_v21 }
 0x226   :  { %v904_v0 = vadd.f32 %v903_v36, %v815_v63  ;;  %v1122_v12 = vmax.f32 %v1047_v52, 0.0 }
 0x228   :  { %v1149_v13 = vmax.f32 %v904_v0, 0.0 }
 0x229   :  { %v959_v37 = vpop.f32.mrf.mxu0 }
 0x22a   :  { %v960_v27 = vadd.f32 %v959_v37, %v2362_v35  ;;  %v1048_v1 = vpop.f32.mrf.mxu1 }
 0x22b   :  { %v816_v4 = vpop.f32.mrf.mxu2 }
 0x22c   :  { %v1049_v5 = vadd.f32 %v1048_v1, %v960_v27  ;;  %v817_v11 = vadd.f32 %v816_v4, %v2248_v53  ;;  %v905_v39 = vpop.f32.mrf.mxu3 }
 0x22e   :  { %v1124_v19 = vmax.f32 %v1049_v5, 0.0  ;;  %v906_v40 = vadd.f32 %v905_v39, %v817_v11 }
 0x230   :  { %v1176_v20 = vpack.c.bf16 %v1124_v19, %v1122_v12  ;;  %v1151_v9 = vmax.f32 %v906_v40, 0.0  ;;  %1359 = vmatmul.bf16.gmra.mxu2 %v2345_v8 }
 0x231   :  { %v962_v21 = vpop.f32.mrf.mxu0 }
 0x232   :  { %v1051_v14 = vpop.f32.mrf.mxu1  ;;  %1448 = vmatmul.bf16.gmra.mxu3 %v1176_v20  ;;  %v2418_v22 = vpack.c.bf16 %v1151_v9, %v1149_v13  ;;  %v963_v26 = vadd.f32 %v962_v21, %v2362_v35 }
 0x233   :  { %v819_v23 = vpop.f32.mrf.mxu2 }
 0x234   :  { %v820_v25 = vadd.f32 %v819_v23, %v2248_v53  ;;  %v908_v17 = vpop.f32.mrf.mxu3  ;;  %1001 = vmatmul.bf16.gmra.mxu0 %v2339_v57  ;;  %v1052_v18 = vadd.f32 %v1051_v14, %v963_v26 }
 0x235   :  { %1090 = vmatmul.bf16.gmra.mxu1 %v2341_v58 }
 0x236   :  { %v909_v6 = vadd.f32 %v908_v17, %v820_v25  ;;  %v1126_v42 = vmax.f32 %v1052_v18, 0.0  ;;  %v1910_v18 = vld [vmem:[%s2145_s12] sm:$0x77] }
 0x238   :  { %v1153_v56 = vmax.f32 %v909_v6, 0.0 }
 0x239   :  { %v964_v10 = vpop.f32.mrf.mxu0 }
 0x23a   :  { %v965_v8 = vadd.f32 %v964_v10, %v2362_v35  ;;  %v1053_v29 = vpop.f32.mrf.mxu1 }
 0x23b   :  { %v821_v2 = vpop.f32.mrf.mxu2 }
 0x23c   :  { %v1054_v3 = vadd.f32 %v1053_v29, %v965_v8  ;;  %v822_v32 = vadd.f32 %v821_v2, %v2248_v53  ;;  %v910_v33 = vpop.f32.mrf.mxu3  ;;  %v2444_v8 = vperm.slane %v1910_v18, 2 }
 0x23e   :  { %v1128_v15 = vmax.f32 %v1054_v3, 0.0  ;;  %v911_v43 = vadd.f32 %v910_v33, %v822_v32 }
 0x240   :  { %v1178_v57 = vpack.c.bf16 %v1128_v15, %v1126_v42  ;;  %v1155_v24 = vmax.f32 %v911_v43, 0.0  ;;  %1364 = vmatmul.bf16.gmra.mxu2 %v2364_v41 }
 0x241   :  { %v967_v58 = vpop.f32.mrf.mxu0 }
 0x242   :  { %v1056_v16 = vpop.f32.mrf.mxu1  ;;  %1453 = vmatmul.bf16.gmra.mxu3 %v1178_v57  ;;  %v2427_v47 = vpack.c.bf16 %v1155_v24, %v1153_v56  ;;  %v968_v50 = vadd.f32 %v967_v58, %v2362_v35 }
 0x243   :  { %v824_v48 = vpop.f32.mrf.mxu2 }
 0x244   :  { %v825_v46 = vadd.f32 %v824_v48, %v2248_v53  ;;  %v913_v49 = vpop.f32.mrf.mxu3  ;;  %1006 = vmatmul.bf16.gmra.mxu0 %v2355_v28  ;;  %v1057_v44 = vadd.f32 %v1056_v16, %v968_v50 }
 0x245   :  { %1095 = vmatmul.bf16.gmra.mxu1 %v2358_v30 }
 0x246   :  { %v914_v60 = vadd.f32 %v913_v49, %v825_v46  ;;  %v1130_v36 = vmax.f32 %v1057_v44, 0.0 }
 0x248   :  { %v1157_v37 = vmax.f32 %v914_v60, 0.0 }
 0x249   :  { %v969_v51 = vpop.f32.mrf.mxu0 }
 0x24a   :  { %v970_v41 = vadd.f32 %v969_v51, %v2362_v35  ;;  %v1058_v61 = vpop.f32.mrf.mxu1 }
 0x24b   :  { %v826_v45 = vpop.f32.mrf.mxu2 }
 0x24c   :  { %v1059_v59 = vadd.f32 %v1058_v61, %v970_v41  ;;  %v827_v7 = vadd.f32 %v826_v45, %v2248_v53  ;;  %v915_v63 = vpop.f32.mrf.mxu3 }
 0x24e   :  { %v1132_v38 = vmax.f32 %v1059_v59, 0.0  ;;  %v916_v0 = vadd.f32 %v915_v63, %v827_v7 }
 0x250   :  { %v1180_v28 = vpack.c.bf16 %v1132_v38, %v1130_v36  ;;  %v1159_v52 = vmax.f32 %v916_v0, 0.0  ;;  %1369 = vmatmul.bf16.gmra.mxu2 %v2373_v55 }
 0x251   :  { %v972_v30 = vpop.f32.mrf.mxu0 }
 0x252   :  { %v1061_v27 = vpop.f32.mrf.mxu1  ;;  %1458 = vmatmul.bf16.gmra.mxu3 %v1180_v28  ;;  %v2436_v1 = vpack.c.bf16 %v1159_v52, %v1157_v37  ;;  %v973_v39 = vadd.f32 %v972_v30, %v2362_v35 }
 0x253   :  { %v829_v4 = vpop.f32.mrf.mxu2 }
 0x254   :  { %v830_v5 = vadd.f32 %v829_v4, %v2248_v53  ;;  %v918_v11 = vpop.f32.mrf.mxu3  ;;  %v1062_v40 = vadd.f32 %v1061_v27, %v973_v39 }
 0x256   :  { %v919_v12 = vadd.f32 %v918_v11, %v830_v5  ;;  %v1134_v23 = vmax.f32 %v1062_v40, 0.0 }
 0x258   :  { %v1161_v26 = vmax.f32 %v919_v12, 0.0 }
 0x259   :  { %v974_v19 = vpop.f32.mrf.mxu0 }
 0x25a   :  { %v975_v13 = vadd.f32 %v974_v19, %v2362_v35  ;;  %v1063_v20 = vpop.f32.mrf.mxu1 }
 0x25b   :  { %v831_v9 = vpop.f32.mrf.mxu2 }
 0x25c   :  { %v1064_v55 = vadd.f32 %v1063_v20, %v975_v13  ;;  %v832_v21 = vadd.f32 %v831_v9, %v2248_v53  ;;  %v920_v14 = vpop.f32.mrf.mxu3 }
 0x25e   :  { %v1136_v25 = vmax.f32 %v1064_v55, 0.0  ;;  %v921_v17 = vadd.f32 %v920_v14, %v832_v21 }
 0x260   :  { %v1182_v6 = vpack.c.bf16 %v1136_v25, %v1134_v23  ;;  %v1163_v10 = vmax.f32 %v921_v17, 0.0  ;;  %1374 = vmatmul.bf16.gmra.mxu2 %v2382_v34 }
 0x261   :  { %v977_v29 = vpop.f32.mrf.mxu0 }
 0x262   :  { %v1066_v2 = vpop.f32.mrf.mxu1  ;;  %1463 = vmatmul.bf16.gmra.mxu3 %v1182_v6  ;;  %v2446_v3 = vpack.c.bf16 %v1163_v10, %v1161_v26  ;;  %v978_v42 = vadd.f32 %v977_v29, %v2362_v35 }
 0x263   :  { %v1335_v32 = vpop.f32.mrf.mxu2 }
 0x264   :  { %v1336_v53 = vadd.f32 %v1335_v32, %v2444_v8  ;;  %v1067_v56 = vadd.f32 %v1066_v2, %v978_v42 }
 0x265   :  { %v1424_v33 = vpop.f32.mrf.mxu3 }
 0x266   :  { %v1425_v15 = vadd.f32 %v1424_v33, %v1336_v53  ;;  %v1138_v46 = vmax.f32 %v1067_v56, 0.0 }
 0x268   :  { %1504 = vst [vmem:[#allocation12] sm:$0xff] %v1425_v15 }
 0x269   :  { %v979_v43 = vpop.f32.mrf.mxu0 }
 0x26a   :  { %v980_v34 = vadd.f32 %v979_v43, %v2362_v35  ;;  %v1068_v57 = vpop.f32.mrf.mxu1 }
 0x26b   :  { %v1337_v24 = vpop.f32.mrf.mxu2 }
 0x26c   :  { %v1069_v58 = vadd.f32 %v1068_v57, %v980_v34  ;;  %v1338_v16 = vadd.f32 %v1337_v24, %v2444_v8 }
 0x26d   :  { %v1426_v48 = vpop.f32.mrf.mxu3 }
 0x26e   :  { %v1140_v49 = vmax.f32 %v1069_v58, 0.0  ;;  %v1427_v50 = vadd.f32 %v1426_v48, %v1338_v16 }
 0x270   :  { %v1184_v60 = vpack.c.bf16 %v1140_v49, %v1138_v46  ;;  %1505 = vst [vmem:[#allocation12 + $0x8] sm:$0xff] %v1427_v50  ;;  %1379 = vmatmul.bf16.gmra.mxu2 %v2391_v54 }
 0x271   :  { %v982_v51 = vpop.f32.mrf.mxu0 }
 0x272   :  { %v1071_v44 = vpop.f32.mrf.mxu1  ;;  %1468 = vmatmul.bf16.gmra.mxu3 %v1184_v60  ;;  %v983_v59 = vadd.f32 %v982_v51, %v2362_v35 }
 0x273   :  { %v1340_v41 = vpop.f32.mrf.mxu2 }
 0x274   :  { %v1341_v61 = vadd.f32 %v1340_v41, %v2444_v8  ;;  %v1072_v36 = vadd.f32 %v1071_v44, %v983_v59 }
 0x275   :  { %v1429_v45 = vpop.f32.mrf.mxu3 }
 0x276   :  { %v1430_v7 = vadd.f32 %v1429_v45, %v1341_v61  ;;  %v1142_v30 = vmax.f32 %v1072_v36, 0.0 }
 0x278   :  { %1506 = vst [vmem:[#allocation12 + $0x10] sm:$0xff] %v1430_v7 }
 0x279   :  { %v984_v63 = vpop.f32.mrf.mxu0 }
 0x27a   :  { %v985_v38 = vadd.f32 %v984_v63, %v2362_v35  ;;  %v1073_v0 = vpop.f32.mrf.mxu1 }
 0x27b   :  { %v1342_v37 = vpop.f32.mrf.mxu2 }
 0x27c   :  { %v1074_v28 = vadd.f32 %v1073_v0, %v985_v38  ;;  %v1343_v54 = vadd.f32 %v1342_v37, %v2444_v8 }
 0x27d   :  { %v1431_v52 = vpop.f32.mrf.mxu3 }
 0x27e   :  { %v1144_v27 = vmax.f32 %v1074_v28, 0.0  ;;  %v1432_v4 = vadd.f32 %v1431_v52, %v1343_v54 }
 0x280   :  { %v1186_v5 = vpack.c.bf16 %v1144_v27, %v1142_v30  ;;  %1507 = vst [vmem:[#allocation12 + $0x18] sm:$0xff] %v1432_v4  ;;  %1384 = vmatmul.bf16.gmra.mxu2 %v2400_v31 }
 0x281   :  { %v987_v11 = vpop.f32.mrf.mxu0 }
 0x282   :  { %v1076_v39 = vpop.f32.mrf.mxu1  ;;  %1473 = vmatmul.bf16.gmra.mxu3 %v1186_v5  ;;  %v988_v13 = vadd.f32 %v987_v11, %v2362_v35 }
 0x283   :  { %v1345_v12 = vpop.f32.mrf.mxu2 }
 0x284   :  { %v1346_v19 = vadd.f32 %v1345_v12, %v2444_v8  ;;  %v1077_v55 = vadd.f32 %v1076_v39, %v988_v13 }
 0x285   :  { %v1434_v40 = vpop.f32.mrf.mxu3 }
 0x286   :  { %v1435_v20 = vadd.f32 %v1434_v40, %v1346_v19  ;;  %v1146_v26 = vmax.f32 %v1077_v55, 0.0 }
 0x288   :  { %1508 = vst [vmem:[#allocation12 + $0x20] sm:$0xff] %v1435_v20 }
 0x289   :  { %v989_v9 = vpop.f32.mrf.mxu0 }
 0x28a   :  { %v990_v21 = vadd.f32 %v989_v9, %v2362_v35  ;;  %v1078_v14 = vpop.f32.mrf.mxu1 }
 0x28b   :  { %v1347_v23 = vpop.f32.mrf.mxu2 }
 0x28c   :  { %v1079_v25 = vadd.f32 %v1078_v14, %v990_v21  ;;  %v1348_v31 = vadd.f32 %v1347_v23, %v2444_v8 }
 0x28d   :  { %v1436_v17 = vpop.f32.mrf.mxu3 }
 0x28e   :  { %v1148_v6 = vmax.f32 %v1079_v25, 0.0  ;;  %v1437_v10 = vadd.f32 %v1436_v17, %v1348_v31 }
 0x290   :  { %v1188_v18 = vpack.c.bf16 %v1148_v6, %v1146_v26  ;;  %1509 = vst [vmem:[#allocation12 + $0x28] sm:$0xff] %v1437_v10  ;;  %1389 = vmatmul.bf16.gmra.mxu2 %v2409_v62 }
 0x291   :  { %v992_v29 = vpop.f32.mrf.mxu0 }
 0x292   :  { %v1081_v2 = vpop.f32.mrf.mxu1  ;;  %1478 = vmatmul.bf16.gmra.mxu3 %v1188_v18  ;;  %v993_v42 = vadd.f32 %v992_v29, %v2362_v35 }
 0x293   :  { %v1350_v32 = vpop.f32.mrf.mxu2 }
 0x294   :  { %v1351_v53 = vadd.f32 %v1350_v32, %v2444_v8  ;;  %v1082_v56 = vadd.f32 %v1081_v2, %v993_v42 }
 0x295   :  { %v1439_v33 = vpop.f32.mrf.mxu3 }
 0x296   :  { %v1440_v15 = vadd.f32 %v1439_v33, %v1351_v53  ;;  %v1150_v48 = vmax.f32 %v1082_v56, 0.0 }
 0x298   :  { %1510 = vst [vmem:[#allocation12 + $0x30] sm:$0xff] %v1440_v15 }
 0x299   :  { %v994_v43 = vpop.f32.mrf.mxu0 }
 0x29a   :  { %v995_v34 = vadd.f32 %v994_v43, %v2362_v35  ;;  %v1083_v57 = vpop.f32.mrf.mxu1 }
 0x29b   :  { %v1352_v24 = vpop.f32.mrf.mxu2 }
 0x29c   :  { %v1084_v58 = vadd.f32 %v1083_v57, %v995_v34  ;;  %v1353_v62 = vadd.f32 %v1352_v24, %v2444_v8 }
 0x29d   :  { %v1441_v16 = vpop.f32.mrf.mxu3 }
 0x29e   :  { %v1152_v46 = vmax.f32 %v1084_v58, 0.0  ;;  %v1442_v49 = vadd.f32 %v1441_v16, %v1353_v62 }
 0x2a0   :  { %v1190_v50 = vpack.c.bf16 %v1152_v46, %v1150_v48  ;;  %1511 = vst [vmem:[#allocation12 + $0x38] sm:$0xff] %v1442_v49  ;;  %1394 = vmatmul.bf16.gmra.mxu2 %v2418_v22 }
 0x2a1   :  { %v997_v60 = vpop.f32.mrf.mxu0 }
 0x2a2   :  { %v1086_v51 = vpop.f32.mrf.mxu1  ;;  %1483 = vmatmul.bf16.gmra.mxu3 %v1190_v50  ;;  %v998_v45 = vadd.f32 %v997_v60, %v2362_v35 }
 0x2a3   :  { %v1355_v44 = vpop.f32.mrf.mxu2 }
 0x2a4   :  { %v1356_v41 = vadd.f32 %v1355_v44, %v2444_v8  ;;  %v1087_v63 = vadd.f32 %v1086_v51, %v998_v45 }
 0x2a5   :  { %v1444_v61 = vpop.f32.mrf.mxu3 }
 0x2a6   :  { %v1445_v59 = vadd.f32 %v1444_v61, %v1356_v41  ;;  %v1154_v54 = vmax.f32 %v1087_v63, 0.0 }
 0x2a8   :  { %1512 = vst [vmem:[#allocation12 + $0x40] sm:$0xff] %v1445_v59 }
 0x2a9   :  { %v999_v7 = vpop.f32.mrf.mxu0 }
 0x2aa   :  { %v1000_v36 = vadd.f32 %v999_v7, %v2362_v35  ;;  %v1088_v38 = vpop.f32.mrf.mxu1 }
 0x2ab   :  { %v1357_v0 = vpop.f32.mrf.mxu2 }
 0x2ac   :  { %v1089_v37 = vadd.f32 %v1088_v38, %v1000_v36  ;;  %v1358_v22 = vadd.f32 %v1357_v0, %v2444_v8 }
 0x2ad   :  { %v1446_v28 = vpop.f32.mrf.mxu3 }
 0x2ae   :  { %v1156_v52 = vmax.f32 %v1089_v37, 0.0  ;;  %v1447_v30 = vadd.f32 %v1446_v28, %v1358_v22 }
 0x2b0   :  { %v1192_v27 = vpack.c.bf16 %v1156_v52, %v1154_v54  ;;  %1513 = vst [vmem:[#allocation12 + $0x48] sm:$0xff] %v1447_v30  ;;  %1399 = vmatmul.bf16.gmra.mxu2 %v2427_v47 }
 0x2b1   :  { %v1002_v4 = vpop.f32.mrf.mxu0 }
 0x2b2   :  { %v1091_v5 = vpop.f32.mrf.mxu1  ;;  %1488 = vmatmul.bf16.gmra.mxu3 %v1192_v27  ;;  %v1003_v19 = vadd.f32 %v1002_v4, %v2362_v35 }
 0x2b3   :  { %v1360_v11 = vpop.f32.mrf.mxu2 }
 0x2b4   :  { %v1361_v39 = vadd.f32 %v1360_v11, %v2444_v8  ;;  %v1092_v20 = vadd.f32 %v1091_v5, %v1003_v19 }
 0x2b5   :  { %v1449_v12 = vpop.f32.mrf.mxu3 }
 0x2b6   :  { %v1450_v40 = vadd.f32 %v1449_v12, %v1361_v39  ;;  %v1158_v25 = vmax.f32 %v1092_v20, 0.0 }
 0x2b8   :  { %1514 = vst [vmem:[#allocation12 + $0x50] sm:$0xff] %v1450_v40 }
 0x2b9   :  { %v1004_v13 = vpop.f32.mrf.mxu0 }
 0x2ba   :  { %v1005_v9 = vadd.f32 %v1004_v13, %v2362_v35  ;;  %v1093_v55 = vpop.f32.mrf.mxu1 }
 0x2bb   :  { %v1362_v21 = vpop.f32.mrf.mxu2 }
 0x2bc   :  { %v1094_v14 = vadd.f32 %v1093_v55, %v1005_v9  ;;  %v1363_v47 = vadd.f32 %v1362_v21, %v2444_v8 }
 0x2bd   :  { %v1451_v23 = vpop.f32.mrf.mxu3 }
 0x2be   :  { %v1160_v31 = vmax.f32 %v1094_v14, 0.0  ;;  %v1452_v17 = vadd.f32 %v1451_v23, %v1363_v47 }
 0x2c0   :  { %v1194_v26 = vpack.c.bf16 %v1160_v31, %v1158_v25  ;;  %1515 = vst [vmem:[#allocation12 + $0x58] sm:$0xff] %v1452_v17  ;;  %1404 = vmatmul.bf16.gmra.mxu2 %v2436_v1 }
 0x2c1   :  { %v1007_v6 = vpop.f32.mrf.mxu0 }
 0x2c2   :  { %v1096_v10 = vpop.f32.mrf.mxu1  ;;  %1493 = vmatmul.bf16.gmra.mxu3 %v1194_v26  ;;  %v1008_v32 = vadd.f32 %v1007_v6, %v2362_v35 }
 0x2c3   :  { %v1365_v18 = vpop.f32.mrf.mxu2 }
 0x2c4   :  { %v1366_v29 = vadd.f32 %v1365_v18, %v2444_v8  ;;  %v1097_v42 = vadd.f32 %v1096_v10, %v1008_v32 }
 0x2c5   :  { %v1454_v2 = vpop.f32.mrf.mxu3 }
 0x2c6   :  { %v1455_v53 = vadd.f32 %v1454_v2, %v1366_v29  ;;  %v1162_v24 = vmax.f32 %v1097_v42, 0.0 }
 0x2c8   :  { %1516 = vst [vmem:[#allocation12 + $0x60] sm:$0xff] %v1455_v53 }
 0x2c9   :  { %v1009_v33 = vpop.f32.mrf.mxu0 }
 0x2ca   :  { %v1010_v15 = vadd.f32 %v1009_v33, %v2362_v35  ;;  %v1098_v43 = vpop.f32.mrf.mxu1 }
 0x2cb   :  { %v1367_v56 = vpop.f32.mrf.mxu2 }
 0x2cc   :  { %v1099_v34 = vadd.f32 %v1098_v43, %v1010_v15  ;;  %v1368_v1 = vadd.f32 %v1367_v56, %v2444_v8 }
 0x2cd   :  { %v1456_v57 = vpop.f32.mrf.mxu3 }
 0x2ce   :  { %v1164_v58 = vmax.f32 %v1099_v34, 0.0  ;;  %v1457_v62 = vadd.f32 %v1456_v57, %v1368_v1 }
 0x2d0   :  { %v1196_v16 = vpack.c.bf16 %v1164_v58, %v1162_v24  ;;  %1517 = vst [vmem:[#allocation12 + $0x68] sm:$0xff] %v1457_v62  ;;  %1409 = vmatmul.bf16.gmra.mxu2 %v2446_v3 }
 0x2d2   :  { %1498 = vmatmul.bf16.gmra.mxu3 %v1196_v16 }
 0x2d3   :  { %v1370_v48 = vpop.f32.mrf.mxu2 }
 0x2d4   :  { %v1371_v46 = vadd.f32 %v1370_v48, %v2444_v8 }
 0x2d5   :  { %v1459_v49 = vpop.f32.mrf.mxu3 }
 0x2d6   :  { %v1460_v50 = vadd.f32 %v1459_v49, %v1371_v46 }
 0x2d8   :  { %1518 = vst [vmem:[#allocation12 + $0x70] sm:$0xff] %v1460_v50 }
 0x2db   :  { %v1372_v35 = vpop.f32.mrf.mxu2 }
 0x2dc   :  { %v1373_v60 = vadd.f32 %v1372_v35, %v2444_v8 }
 0x2dd   :  { %v1461_v51 = vpop.f32.mrf.mxu3 }
 0x2de   :  { %v1462_v44 = vadd.f32 %v1461_v51, %v1373_v60 }
 0x2e0   :  { %1519 = vst [vmem:[#allocation12 + $0x78] sm:$0xff] %v1462_v44 }
 0x2e3   :  { %v1375_v41 = vpop.f32.mrf.mxu2 }
 0x2e4   :  { %v1376_v61 = vadd.f32 %v1375_v41, %v2444_v8 }
 0x2e5   :  { %v1464_v45 = vpop.f32.mrf.mxu3 }
 0x2e6   :  { %v1465_v59 = vadd.f32 %v1464_v45, %v1376_v61 }
 0x2e8   :  { %1520 = vst [vmem:[#allocation12 + $0x80] sm:$0xff] %v1465_v59 }
 0x2eb   :  { %v1377_v3 = vpop.f32.mrf.mxu2 }
 0x2ec   :  { %v1378_v7 = vadd.f32 %v1377_v3, %v2444_v8 }
 0x2ed   :  { %v1466_v63 = vpop.f32.mrf.mxu3 }
 0x2ee   :  { %v1467_v36 = vadd.f32 %v1466_v63, %v1378_v7 }
 0x2f0   :  { %1521 = vst [vmem:[#allocation12 + $0x88] sm:$0xff] %v1467_v36 }
 0x2f3   :  { %v1380_v38 = vpop.f32.mrf.mxu2 }
 0x2f4   :  { %v1381_v0 = vadd.f32 %v1380_v38, %v2444_v8 }
 0x2f5   :  { %v1469_v37 = vpop.f32.mrf.mxu3 }
 0x2f6   :  { %v1470_v22 = vadd.f32 %v1469_v37, %v1381_v0 }
 0x2f8   :  { %1522 = vst [vmem:[#allocation12 + $0x90] sm:$0xff] %v1470_v22 }
 0x2fb   :  { %v1382_v28 = vpop.f32.mrf.mxu2 }
 0x2fc   :  { %v1383_v54 = vadd.f32 %v1382_v28, %v2444_v8 }
 0x2fd   :  { %v1471_v52 = vpop.f32.mrf.mxu3 }
 0x2fe   :  { %v1472_v30 = vadd.f32 %v1471_v52, %v1383_v54 }
 0x300   :  { %1523 = vst [vmem:[#allocation12 + $0x98] sm:$0xff] %v1472_v30 }
 0x303   :  { %v1385_v27 = vpop.f32.mrf.mxu2 }
 0x304   :  { %v1386_v4 = vadd.f32 %v1385_v27, %v2444_v8 }
 0x305   :  { %v1474_v5 = vpop.f32.mrf.mxu3 }
 0x306   :  { %v1475_v11 = vadd.f32 %v1474_v5, %v1386_v4 }
 0x308   :  { %1524 = vst [vmem:[#allocation12 + $0xa0] sm:$0xff] %v1475_v11 }
 0x30b   :  { %v1387_v39 = vpop.f32.mrf.mxu2 }
 0x30c   :  { %v1388_v12 = vadd.f32 %v1387_v39, %v2444_v8 }
 0x30d   :  { %v1476_v19 = vpop.f32.mrf.mxu3 }
 0x30e   :  { %v1477_v40 = vadd.f32 %v1476_v19, %v1388_v12 }
 0x310   :  { %1525 = vst [vmem:[#allocation12 + $0xa8] sm:$0xff] %v1477_v40 }
 0x313   :  { %v1390_v13 = vpop.f32.mrf.mxu2 }
 0x314   :  { %v1391_v20 = vadd.f32 %v1390_v13, %v2444_v8 }
 0x315   :  { %v1479_v9 = vpop.f32.mrf.mxu3 }
 0x316   :  { %v1480_v55 = vadd.f32 %v1479_v9, %v1391_v20 }
 0x318   :  { %1526 = vst [vmem:[#allocation12 + $0xb0] sm:$0xff] %v1480_v55 }
 0x31b   :  { %v1392_v21 = vpop.f32.mrf.mxu2 }
 0x31c   :  { %v1393_v14 = vadd.f32 %v1392_v21, %v2444_v8 }
 0x31d   :  { %v1481_v47 = vpop.f32.mrf.mxu3 }
 0x31e   :  { %v1482_v23 = vadd.f32 %v1481_v47, %v1393_v14 }
 0x320   :  { %1527 = vst [vmem:[#allocation12 + $0xb8] sm:$0xff] %v1482_v23 }
 0x323   :  { %v1395_v25 = vpop.f32.mrf.mxu2 }
 0x324   :  { %v1396_v31 = vadd.f32 %v1395_v25, %v2444_v8 }
 0x325   :  { %v1484_v17 = vpop.f32.mrf.mxu3 }
 0x326   :  { %v1485_v26 = vadd.f32 %v1484_v17, %v1396_v31 }
 0x328   :  { %1528 = vst [vmem:[#allocation12 + $0xc0] sm:$0xff] %v1485_v26 }
 0x32b   :  { %v1397_v6 = vpop.f32.mrf.mxu2 }
 0x32c   :  { %v1398_v10 = vadd.f32 %v1397_v6, %v2444_v8 }
 0x32d   :  { %v1486_v18 = vpop.f32.mrf.mxu3 }
 0x32e   :  { %v1487_v29 = vadd.f32 %v1486_v18, %v1398_v10 }
 0x330   :  { %1529 = vst [vmem:[#allocation12 + $0xc8] sm:$0xff] %v1487_v29 }
 0x333   :  { %v1400_v2 = vpop.f32.mrf.mxu2 }
 0x334   :  { %v1401_v32 = vadd.f32 %v1400_v2, %v2444_v8 }
 0x335   :  { %v1489_v53 = vpop.f32.mrf.mxu3 }
 0x336   :  { %v1490_v33 = vadd.f32 %v1489_v53, %v1401_v32 }
 0x338   :  { %1530 = vst [vmem:[#allocation12 + $0xd0] sm:$0xff] %v1490_v33 }
 0x33b   :  { %v1402_v42 = vpop.f32.mrf.mxu2 }
 0x33c   :  { %v1403_v15 = vadd.f32 %v1402_v42, %v2444_v8 }
 0x33d   :  { %v1491_v43 = vpop.f32.mrf.mxu3 }
 0x33e   :  { %v1492_v56 = vadd.f32 %v1491_v43, %v1403_v15 }
 0x340   :  { %1531 = vst [vmem:[#allocation12 + $0xd8] sm:$0xff] %v1492_v56 }
 0x343   :  { %v1405_v34 = vpop.f32.mrf.mxu2 }
 0x344   :  { %v1406_v1 = vadd.f32 %v1405_v34, %v2444_v8 }
 0x345   :  { %v1494_v57 = vpop.f32.mrf.mxu3 }
 0x346   :  { %v1495_v24 = vadd.f32 %v1494_v57, %v1406_v1 }
 0x348   :  { %1532 = vst [vmem:[#allocation12 + $0xe0] sm:$0xff] %v1495_v24 }
 0x34b   :  { %v1407_v58 = vpop.f32.mrf.mxu2 }
 0x34c   :  { %v1408_v62 = vadd.f32 %v1407_v58, %v2444_v8 }
 0x34d   :  { %v1496_v16 = vpop.f32.mrf.mxu3 }
 0x34e   :  { %v1497_v48 = vadd.f32 %v1496_v16, %v1408_v62 }
 0x350   :  { %1533 = vst [vmem:[#allocation12 + $0xe8] sm:$0xff] %v1497_v48 }
 0x353   :  { %v1410_v46 = vpop.f32.mrf.mxu2 }
 0x354   :  { %v1411_v49 = vadd.f32 %v1410_v46, %v2444_v8 }
 0x355   :  { %v1499_v50 = vpop.f32.mrf.mxu3 }
 0x356   :  { %v1500_v35 = vadd.f32 %v1499_v50, %v1411_v49 }
 0x358   :  { %1534 = vst [vmem:[#allocation12 + $0xf0] sm:$0xff] %v1500_v35 }
 0x35b   :  { %v1412_v60 = vpop.f32.mrf.mxu2 }
 0x35c   :  { %v1413_v51 = vadd.f32 %v1412_v60, %v2444_v8 }
 0x35d   :  { %v1501_v44 = vpop.f32.mrf.mxu3 }
 0x35e   :  { %v1502_v41 = vadd.f32 %v1501_v44, %v1413_v51 }
 0x360   :  { %1535 = vst [vmem:[#allocation12 + $0xf8] sm:$0xff] %v1502_v41 }
 0x361   :  { %1548 = dma.vmem_to_hbm [thread:$0]  %s1541_s5, 4096, %s1543_s15, [#allocation6], %s2040_s18, %s2040_s18, %s2041_s19  }
 0x362   :  { %2037 = dma.done.wait [#allocation6], 4096  }
 0x363   :  { %2038 = vsyncadd [#allocation6], 4294963200 }
 0x364   :  { %1553 = vsyncpa [#allocation5], 1 }
 0x365   :  { %1554 = vsyncpa [#allocation8], 1 }
 0x366   :  { %1555 = vsyncpa [#allocation11], 1 }
 0x367   :  { %1556 = vsyncpa [#allocation6], 1 }

</bundles_post_ra>
